<compile_context>
chip_gen: v5e
topology: v5e:2x2
jax: 0.10.0
libtpu: 0.0.40
codegen_flags: <defaults>
</compile_context>

<pallas_src>
import jax
import jax.numpy as jnp
from jax import lax
from jax.experimental import pallas as pl
from jax.experimental.pallas import tpu as pltpu


# --------------------------------------------------------------------------
# Pallas kernel: direct convolution (im2col fused in VMEM, per-tap matmuls)
# --------------------------------------------------------------------------
def _make_conv_kernel(kh, kw, sH, sW, Hq, Wo, tr, Cin, Cout):
    mt = tr * Wo  # rows of the output tile (flattened spatial)

    def kernel(x_ref, w_ref, b_ref, o_ref):
        # x_ref: (1, R*Hq, Wq, Cin)  bf16  stride-decomposed padded sample
        # w_ref: (kh*kw, Cin, Cout)  bf16  resident across the whole grid
        # b_ref: (1, Cout)           f32
        # o_ref: (1, mt, Cout)       f32
        r = pl.program_id(1)
        acc = jnp.zeros((mt, Cout), jnp.float32)
        for dh in range(kh):
            rh, qh = dh % sH, dh // sH
            for dw in range(kw):
                rw, qw = dw % sW, dw // sW
                plane = rh * sW + rw
                row0 = plane * Hq + r * tr + qh
                # contiguous (tr, Wo, Cin) tap slice straight out of VMEM
                xt = x_ref[0, pl.ds(row0, tr), qw:qw + Wo, :]
                acc = acc + jnp.dot(xt.reshape(mt, Cin),
                                    w_ref[dh * kw + dw],
                                    preferred_element_type=jnp.float32)
        # NOTE: for small Cout the store is lane-masked; at real sizes pad Cout
        # to 128 (or transpose the product) to make the writeback lane-dense.
        o_ref[0] = (acc + b_ref[...]).astype(o_ref.dtype)

    return kernel


def _pick_row_tile(Ho, Wo, block_m):
    cands = [d for d in range(1, Ho + 1)
             if Ho % d == 0 and (d * Wo) % 8 == 0 and d * Wo <= block_m]
    return max(cands) if cands else Ho  # full extent is always a legal block


# --------------------------------------------------------------------------
# Wrapper: Conv_2d.forward  (NCHW in -> NCHW out)
# --------------------------------------------------------------------------
def conv2d_pallas(x, weight, bias=None, stride=(1, 1), padding=(0, 0),
                  block_m=1024):
    N, Cin, H, W = x.shape
    Cout, Cin_w, kh, kw = weight.shape
    assert Cin == Cin_w
    sH, sW = stride
    pH, pW = padding
    Ho = (H + 2 * pH - kh) // sH + 1
    Wo = (W + 2 * pW - kw) // sW + 1
    assert Ho > 0 and Wo > 0

    # channels-last + spatial zero pad: one cheap XLA pass, no im2col blow-up
    xp = jnp.pad(jnp.transpose(x, (0, 2, 3, 1)),
                 ((0, 0), (pH, pH), (pW, pW), (0, 0)))

    # Stride (sub-pixel) decomposition into sH*sW residue planes so the kernel
    # only does contiguous slices.  Same total size as the input (no blow-up);
    # for stride 1 this is the identity.
    Hq = Ho + (kh - 1) // sH
    Wq = Wo + (kw - 1) // sW
    planes = []
    for rh in range(sH):
        for rw in range(sW):
            p = xp[:, rh::sH, rw::sW, :]
            pad_h = max(0, Hq - p.shape[1])
            pad_w = max(0, Wq - p.shape[2])
            if pad_h or pad_w:
                p = jnp.pad(p, ((0, 0), (0, pad_h), (0, pad_w), (0, 0)))
            planes.append(p[:, :Hq, :Wq, :])
    R = sH * sW
    xs = jnp.stack(planes, axis=1).reshape(N, R * Hq, Wq, Cin)
    xs = xs.astype(jnp.bfloat16)                       # bf16 feed to the MXU

    # weight (Cout, Cin, kh, kw) -> (kh*kw, Cin, Cout), bf16
    w_k = jnp.transpose(weight, (2, 3, 1, 0)).reshape(kh * kw, Cin, Cout)
    w_k = w_k.astype(jnp.bfloat16)
    b = jnp.zeros((Cout,), jnp.float32) if bias is None else bias.astype(jnp.float32)
    b = b.reshape(1, Cout)

    tr = _pick_row_tile(Ho, Wo, block_m)
    mt = tr * Wo
    grid = (N, Ho // tr)

    kernel = _make_conv_kernel(kh, kw, sH, sW, Hq, Wo, tr, Cin, Cout)
    out = pl.pallas_call(
        kernel,
        out_shape=jax.ShapeDtypeStruct((N, Ho * Wo, Cout), jnp.float32),
        grid=grid,
        in_specs=[
            # full padded sample; block index constant across the row axis so
            # it stays resident in VMEM (no re-DMA between row tiles)
            pl.BlockSpec((1, R * Hq, Wq, Cin), lambda n, r: (n, 0, 0, 0)),
            pl.BlockSpec((kh * kw, Cin, Cout), lambda n, r: (0, 0, 0)),
            pl.BlockSpec((1, Cout), lambda n, r: (0, 0)),
        ],
        out_specs=pl.BlockSpec((1, mt, Cout), lambda n, r: (n, r, 0)),
        compiler_params=pltpu.CompilerParams(
            dimension_semantics=("parallel", "arbitrary")),
    )(xs, w_k, b)

    return out.reshape(N, Ho, Wo, Cout).transpose(0, 3, 1, 2)


# --------------------------------------------------------------------------
# Pure-JAX reference (XLA conv path) for correctness check
# --------------------------------------------------------------------------
def reference_conv2d(x, weight, bias, stride, padding):
    y = lax.conv_general_dilated(
        x, weight, window_strides=stride,
        padding=[(padding[0], padding[0]), (padding[1], padding[1])],
        dimension_numbers=("NCHW", "OIHW", "NCHW"),
        precision=lax.Precision.HIGHEST)
    if bias is not None:
        y = y + bias.reshape(1, -1, 1, 1)
    return y


if __name__ == "__main__":
    key = jax.random.PRNGKey(0)
    k1, k2, k3 = jax.random.split(key, 3)

    N, Cin, H, W = 2, 8, 16, 16
    x = jax.random.normal(k1, (N, Cin, H, W), jnp.float32)

    # bf16-rounded copies for a fair reference (kernel feeds the MXU bf16)
    xr = x.astype(jnp.bfloat16).astype(jnp.float32)

    # Config A: Conv_2d(8, 32, kernel_size=3, stride=1, padding=1)  (defaults: bias/BN off)
    w1 = jax.random.uniform(k2, (32, Cin, 3, 3), jnp.float32, -0.1, 0.1)
    out1 = conv2d_pallas(x, w1, bias=None, stride=(1, 1), padding=(1, 1), block_m=128)
    out1 = jax.block_until_ready(out1)
    ref1 = reference_conv2d(xr, w1.astype(jnp.bfloat16).astype(jnp.float32),
                            None, (1, 1), (1, 1))
    assert out1.shape == ref1.shape == (N, 32, 16, 16), (out1.shape, ref1.shape)
    if not jnp.allclose(out1, ref1, atol=2e-3, rtol=2e-3):
        raise AssertionError("Pallas Conv_2d mismatch vs reference (stride 1)")

    # Config B: stride=2 (exercises the stride-decomposition path)
    w2 = jax.random.uniform(k3, (16, Cin, 3, 3), jnp.float32, -0.1, 0.1)
    out2 = conv2d_pallas(x, w2, bias=None, stride=(2, 2), padding=(1, 1), block_m=128)
    out2 = jax.block_until_ready(out2)
    ref2 = reference_conv2d(xr, w2.astype(jnp.bfloat16).astype(jnp.float32),
                            None, (2, 2), (1, 1))
    assert out2.shape == ref2.shape == (N, 16, 8, 8), (out2.shape, ref2.shape)
    if not jnp.allclose(out2, ref2, atol=2e-3, rtol=2e-3):
        raise AssertionError("Pallas Conv_2d mismatch vs reference (stride 2)")

    print("KERNEL_OK")
</pallas_src>

<mosaic_0001>
module attributes {stable_mosaic.version = 11 : i64} {
  func.func @kernel(%arg0: i32, %arg1: i32, %arg2: memref<1x18x18x8xbf16, #tpu.memory_space<vmem>>, %arg3: memref<9x8x32xbf16, #tpu.memory_space<vmem>>, %arg4: memref<1x32xf32, #tpu.memory_space<vmem>>, %arg5: memref<1x128x32xf32, #tpu.memory_space<vmem>>) attributes {dimension_semantics = [#tpu.dimension_semantics<parallel>, #tpu.dimension_semantics<arbitrary>], iteration_bounds = array<i64: 2, 2>, scalar_prefetch = 0 : i64, scratch_operands = 0 : i64, tpu.core_type = #tpu.core_type<tc>, window_params = [{transform_indices = @transform_0, window_bounds = array<i64: 1, 18, 18, 8>}, {pipeline_mode = #tpu.pipeline_mode<synchronous>, transform_indices = @transform_1, window_bounds = array<i64: 9, 8, 32>}, {pipeline_mode = #tpu.pipeline_mode<synchronous>, transform_indices = @transform_2, window_bounds = array<i64: 1, 32>}, {transform_indices = @transform_3, window_bounds = array<i64: 1, 128, 32>}]} {
    %cst = arith.constant 0.000000e+00 : f32
    %0 = vector.broadcast %cst : f32 to vector<128x32xf32>
    %c8_i32 = arith.constant 8 : i32
    %1 = arith.muli %arg1, %c8_i32 : i32
    %c0_i32 = arith.constant 0 : i32
    %2 = arith.addi %c0_i32, %1 : i32
    %c0_i32_0 = arith.constant 0 : i32
    %3 = arith.addi %2, %c0_i32_0 : i32
    %c0 = arith.constant 0 : index
    %4 = arith.index_cast %3 : i32 to index
    %c0_1 = arith.constant 0 : index
    %c0_2 = arith.constant 0 : index
    %5 = vector.load %arg2[%c0, %4, %c0_1, %c0_2] : memref<1x18x18x8xbf16, #tpu.memory_space<vmem>>, vector<1x8x16x8xbf16>
    %6 = vector.shape_cast %5 : vector<1x8x16x8xbf16> to vector<8x16x8xbf16>
    %7 = vector.shape_cast %6 : vector<8x16x8xbf16> to vector<128x8xbf16>
    %c0_3 = arith.constant 0 : index
    %c0_4 = arith.constant 0 : index
    %c0_5 = arith.constant 0 : index
    %8 = vector.load %arg3[%c0_3, %c0_4, %c0_5] : memref<9x8x32xbf16, #tpu.memory_space<vmem>>, vector<1x8x32xbf16>
    %9 = vector.shape_cast %8 : vector<1x8x32xbf16> to vector<8x32xbf16>
    %cst_6 = arith.constant dense<0.000000e+00> : vector<128x32xf32>
    %10 = tpu.matmul %7, %9, %cst_6 {dimension_numbers = #tpu.dot_dimension_numbers<[1], [0], [0], [1], [0, 0, 1, 1], [], []>} : vector<128x8xbf16>, vector<8x32xbf16>, vector<128x32xf32> -> vector<128x32xf32>
    %11 = arith.addf %0, %10 : vector<128x32xf32>
    %c8_i32_7 = arith.constant 8 : i32
    %12 = arith.muli %arg1, %c8_i32_7 : i32
    %c0_i32_8 = arith.constant 0 : i32
    %13 = arith.addi %c0_i32_8, %12 : i32
    %c0_i32_9 = arith.constant 0 : i32
    %14 = arith.addi %13, %c0_i32_9 : i32
    %c0_10 = arith.constant 0 : index
    %15 = arith.index_cast %14 : i32 to index
    %c1 = arith.constant 1 : index
    %c0_11 = arith.constant 0 : index
    %16 = vector.load %arg2[%c0_10, %15, %c1, %c0_11] : memref<1x18x18x8xbf16, #tpu.memory_space<vmem>>, vector<1x8x16x8xbf16>
    %17 = vector.shape_cast %16 : vector<1x8x16x8xbf16> to vector<8x16x8xbf16>
    %18 = vector.shape_cast %17 : vector<8x16x8xbf16> to vector<128x8xbf16>
    %c1_12 = arith.constant 1 : index
    %c0_13 = arith.constant 0 : index
    %c0_14 = arith.constant 0 : index
    %19 = vector.load %arg3[%c1_12, %c0_13, %c0_14] : memref<9x8x32xbf16, #tpu.memory_space<vmem>>, vector<1x8x32xbf16>
    %20 = vector.shape_cast %19 : vector<1x8x32xbf16> to vector<8x32xbf16>
    %cst_15 = arith.constant dense<0.000000e+00> : vector<128x32xf32>
    %21 = tpu.matmul %18, %20, %cst_15 {dimension_numbers = #tpu.dot_dimension_numbers<[1], [0], [0], [1], [0, 0, 1, 1], [], []>} : vector<128x8xbf16>, vector<8x32xbf16>, vector<128x32xf32> -> vector<128x32xf32>
    %22 = arith.addf %11, %21 : vector<128x32xf32>
    %c8_i32_16 = arith.constant 8 : i32
    %23 = arith.muli %arg1, %c8_i32_16 : i32
    %c0_i32_17 = arith.constant 0 : i32
    %24 = arith.addi %c0_i32_17, %23 : i32
    %c0_i32_18 = arith.constant 0 : i32
    %25 = arith.addi %24, %c0_i32_18 : i32
    %c0_19 = arith.constant 0 : index
    %26 = arith.index_cast %25 : i32 to index
    %c2 = arith.constant 2 : index
    %c0_20 = arith.constant 0 : index
    %27 = vector.load %arg2[%c0_19, %26, %c2, %c0_20] : memref<1x18x18x8xbf16, #tpu.memory_space<vmem>>, vector<1x8x16x8xbf16>
    %28 = vector.shape_cast %27 : vector<1x8x16x8xbf16> to vector<8x16x8xbf16>
    %29 = vector.shape_cast %28 : vector<8x16x8xbf16> to vector<128x8xbf16>
    %c2_21 = arith.constant 2 : index
    %c0_22 = arith.constant 0 : index
    %c0_23 = arith.constant 0 : index
    %30 = vector.load %arg3[%c2_21, %c0_22, %c0_23] : memref<9x8x32xbf16, #tpu.memory_space<vmem>>, vector<1x8x32xbf16>
    %31 = vector.shape_cast %30 : vector<1x8x32xbf16> to vector<8x32xbf16>
    %cst_24 = arith.constant dense<0.000000e+00> : vector<128x32xf32>
    %32 = tpu.matmul %29, %31, %cst_24 {dimension_numbers = #tpu.dot_dimension_numbers<[1], [0], [0], [1], [0, 0, 1, 1], [], []>} : vector<128x8xbf16>, vector<8x32xbf16>, vector<128x32xf32> -> vector<128x32xf32>
    %33 = arith.addf %22, %32 : vector<128x32xf32>
    %c8_i32_25 = arith.constant 8 : i32
    %34 = arith.muli %arg1, %c8_i32_25 : i32
    %c0_i32_26 = arith.constant 0 : i32
    %35 = arith.addi %c0_i32_26, %34 : i32
    %c1_i32 = arith.constant 1 : i32
    %36 = arith.addi %35, %c1_i32 : i32
    %c0_27 = arith.constant 0 : index
    %37 = arith.index_cast %36 : i32 to index
    %c0_28 = arith.constant 0 : index
    %c0_29 = arith.constant 0 : index
    %38 = vector.load %arg2[%c0_27, %37, %c0_28, %c0_29] : memref<1x18x18x8xbf16, #tpu.memory_space<vmem>>, vector<1x8x16x8xbf16>
    %39 = vector.shape_cast %38 : vector<1x8x16x8xbf16> to vector<8x16x8xbf16>
    %40 = vector.shape_cast %39 : vector<8x16x8xbf16> to vector<128x8xbf16>
    %c3 = arith.constant 3 : index
    %c0_30 = arith.constant 0 : index
    %c0_31 = arith.constant 0 : index
    %41 = vector.load %arg3[%c3, %c0_30, %c0_31] : memref<9x8x32xbf16, #tpu.memory_space<vmem>>, vector<1x8x32xbf16>
    %42 = vector.shape_cast %41 : vector<1x8x32xbf16> to vector<8x32xbf16>
    %cst_32 = arith.constant dense<0.000000e+00> : vector<128x32xf32>
    %43 = tpu.matmul %40, %42, %cst_32 {dimension_numbers = #tpu.dot_dimension_numbers<[1], [0], [0], [1], [0, 0, 1, 1], [], []>} : vector<128x8xbf16>, vector<8x32xbf16>, vector<128x32xf32> -> vector<128x32xf32>
    %44 = arith.addf %33, %43 : vector<128x32xf32>
    %c8_i32_33 = arith.constant 8 : i32
    %45 = arith.muli %arg1, %c8_i32_33 : i32
    %c0_i32_34 = arith.constant 0 : i32
    %46 = arith.addi %c0_i32_34, %45 : i32
    %c1_i32_35 = arith.constant 1 : i32
    %47 = arith.addi %46, %c1_i32_35 : i32
    %c0_36 = arith.constant 0 : index
    %48 = arith.index_cast %47 : i32 to index
    %c1_37 = arith.constant 1 : index
    %c0_38 = arith.constant 0 : index
    %49 = vector.load %arg2[%c0_36, %48, %c1_37, %c0_38] : memref<1x18x18x8xbf16, #tpu.memory_space<vmem>>, vector<1x8x16x8xbf16>
    %50 = vector.shape_cast %49 : vector<1x8x16x8xbf16> to vector<8x16x8xbf16>
    %51 = vector.shape_cast %50 : vector<8x16x8xbf16> to vector<128x8xbf16>
    %c4 = arith.constant 4 : index
    %c0_39 = arith.constant 0 : index
    %c0_40 = arith.constant 0 : index
    %52 = vector.load %arg3[%c4, %c0_39, %c0_40] : memref<9x8x32xbf16, #tpu.memory_space<vmem>>, vector<1x8x32xbf16>
    %53 = vector.shape_cast %52 : vector<1x8x32xbf16> to vector<8x32xbf16>
    %cst_41 = arith.constant dense<0.000000e+00> : vector<128x32xf32>
    %54 = tpu.matmul %51, %53, %cst_41 {dimension_numbers = #tpu.dot_dimension_numbers<[1], [0], [0], [1], [0, 0, 1, 1], [], []>} : vector<128x8xbf16>, vector<8x32xbf16>, vector<128x32xf32> -> vector<128x32xf32>
    %55 = arith.addf %44, %54 : vector<128x32xf32>
    %c8_i32_42 = arith.constant 8 : i32
    %56 = arith.muli %arg1, %c8_i32_42 : i32
    %c0_i32_43 = arith.constant 0 : i32
    %57 = arith.addi %c0_i32_43, %56 : i32
    %c1_i32_44 = arith.constant 1 : i32
    %58 = arith.addi %57, %c1_i32_44 : i32
    %c0_45 = arith.constant 0 : index
    %59 = arith.index_cast %58 : i32 to index
    %c2_46 = arith.constant 2 : index
    %c0_47 = arith.constant 0 : index
    %60 = vector.load %arg2[%c0_45, %59, %c2_46, %c0_47] : memref<1x18x18x8xbf16, #tpu.memory_space<vmem>>, vector<1x8x16x8xbf16>
    %61 = vector.shape_cast %60 : vector<1x8x16x8xbf16> to vector<8x16x8xbf16>
    %62 = vector.shape_cast %61 : vector<8x16x8xbf16> to vector<128x8xbf16>
    %c5 = arith.constant 5 : index
    %c0_48 = arith.constant 0 : index
    %c0_49 = arith.constant 0 : index
    %63 = vector.load %arg3[%c5, %c0_48, %c0_49] : memref<9x8x32xbf16, #tpu.memory_space<vmem>>, vector<1x8x32xbf16>
    %64 = vector.shape_cast %63 : vector<1x8x32xbf16> to vector<8x32xbf16>
    %cst_50 = arith.constant dense<0.000000e+00> : vector<128x32xf32>
    %65 = tpu.matmul %62, %64, %cst_50 {dimension_numbers = #tpu.dot_dimension_numbers<[1], [0], [0], [1], [0, 0, 1, 1], [], []>} : vector<128x8xbf16>, vector<8x32xbf16>, vector<128x32xf32> -> vector<128x32xf32>
    %66 = arith.addf %55, %65 : vector<128x32xf32>
    %c8_i32_51 = arith.constant 8 : i32
    %67 = arith.muli %arg1, %c8_i32_51 : i32
    %c0_i32_52 = arith.constant 0 : i32
    %68 = arith.addi %c0_i32_52, %67 : i32
    %c2_i32 = arith.constant 2 : i32
    %69 = arith.addi %68, %c2_i32 : i32
    %c0_53 = arith.constant 0 : index
    %70 = arith.index_cast %69 : i32 to index
    %c0_54 = arith.constant 0 : index
    %c0_55 = arith.constant 0 : index
    %71 = vector.load %arg2[%c0_53, %70, %c0_54, %c0_55] : memref<1x18x18x8xbf16, #tpu.memory_space<vmem>>, vector<1x8x16x8xbf16>
    %72 = vector.shape_cast %71 : vector<1x8x16x8xbf16> to vector<8x16x8xbf16>
    %73 = vector.shape_cast %72 : vector<8x16x8xbf16> to vector<128x8xbf16>
    %c6 = arith.constant 6 : index
    %c0_56 = arith.constant 0 : index
    %c0_57 = arith.constant 0 : index
    %74 = vector.load %arg3[%c6, %c0_56, %c0_57] : memref<9x8x32xbf16, #tpu.memory_space<vmem>>, vector<1x8x32xbf16>
    %75 = vector.shape_cast %74 : vector<1x8x32xbf16> to vector<8x32xbf16>
    %cst_58 = arith.constant dense<0.000000e+00> : vector<128x32xf32>
    %76 = tpu.matmul %73, %75, %cst_58 {dimension_numbers = #tpu.dot_dimension_numbers<[1], [0], [0], [1], [0, 0, 1, 1], [], []>} : vector<128x8xbf16>, vector<8x32xbf16>, vector<128x32xf32> -> vector<128x32xf32>
    %77 = arith.addf %66, %76 : vector<128x32xf32>
    %c8_i32_59 = arith.constant 8 : i32
    %78 = arith.muli %arg1, %c8_i32_59 : i32
    %c0_i32_60 = arith.constant 0 : i32
    %79 = arith.addi %c0_i32_60, %78 : i32
    %c2_i32_61 = arith.constant 2 : i32
    %80 = arith.addi %79, %c2_i32_61 : i32
    %c0_62 = arith.constant 0 : index
    %81 = arith.index_cast %80 : i32 to index
    %c1_63 = arith.constant 1 : index
    %c0_64 = arith.constant 0 : index
    %82 = vector.load %arg2[%c0_62, %81, %c1_63, %c0_64] : memref<1x18x18x8xbf16, #tpu.memory_space<vmem>>, vector<1x8x16x8xbf16>
    %83 = vector.shape_cast %82 : vector<1x8x16x8xbf16> to vector<8x16x8xbf16>
    %84 = vector.shape_cast %83 : vector<8x16x8xbf16> to vector<128x8xbf16>
    %c7 = arith.constant 7 : index
    %c0_65 = arith.constant 0 : index
    %c0_66 = arith.constant 0 : index
    %85 = vector.load %arg3[%c7, %c0_65, %c0_66] : memref<9x8x32xbf16, #tpu.memory_space<vmem>>, vector<1x8x32xbf16>
    %86 = vector.shape_cast %85 : vector<1x8x32xbf16> to vector<8x32xbf16>
    %cst_67 = arith.constant dense<0.000000e+00> : vector<128x32xf32>
    %87 = tpu.matmul %84, %86, %cst_67 {dimension_numbers = #tpu.dot_dimension_numbers<[1], [0], [0], [1], [0, 0, 1, 1], [], []>} : vector<128x8xbf16>, vector<8x32xbf16>, vector<128x32xf32> -> vector<128x32xf32>
    %88 = arith.addf %77, %87 : vector<128x32xf32>
    %c8_i32_68 = arith.constant 8 : i32
    %89 = arith.muli %arg1, %c8_i32_68 : i32
    %c0_i32_69 = arith.constant 0 : i32
    %90 = arith.addi %c0_i32_69, %89 : i32
    %c2_i32_70 = arith.constant 2 : i32
    %91 = arith.addi %90, %c2_i32_70 : i32
    %c0_71 = arith.constant 0 : index
    %92 = arith.index_cast %91 : i32 to index
    %c2_72 = arith.constant 2 : index
    %c0_73 = arith.constant 0 : index
    %93 = vector.load %arg2[%c0_71, %92, %c2_72, %c0_73] : memref<1x18x18x8xbf16, #tpu.memory_space<vmem>>, vector<1x8x16x8xbf16>
    %94 = vector.shape_cast %93 : vector<1x8x16x8xbf16> to vector<8x16x8xbf16>
    %95 = vector.shape_cast %94 : vector<8x16x8xbf16> to vector<128x8xbf16>
    %c8 = arith.constant 8 : index
    %c0_74 = arith.constant 0 : index
    %c0_75 = arith.constant 0 : index
    %96 = vector.load %arg3[%c8, %c0_74, %c0_75] : memref<9x8x32xbf16, #tpu.memory_space<vmem>>, vector<1x8x32xbf16>
    %97 = vector.shape_cast %96 : vector<1x8x32xbf16> to vector<8x32xbf16>
    %cst_76 = arith.constant dense<0.000000e+00> : vector<128x32xf32>
    %98 = tpu.matmul %95, %97, %cst_76 {dimension_numbers = #tpu.dot_dimension_numbers<[1], [0], [0], [1], [0, 0, 1, 1], [], []>} : vector<128x8xbf16>, vector<8x32xbf16>, vector<128x32xf32> -> vector<128x32xf32>
    %99 = arith.addf %88, %98 : vector<128x32xf32>
    %c0_77 = arith.constant 0 : index
    %c0_78 = arith.constant 0 : index
    %100 = vector.load %arg4[%c0_77, %c0_78] : memref<1x32xf32, #tpu.memory_space<vmem>>, vector<1x32xf32>
    %101 = vector.broadcast %100 : vector<1x32xf32> to vector<128x32xf32>
    %102 = arith.addf %99, %101 : vector<128x32xf32>
    %c0_79 = arith.constant 0 : index
    %c0_80 = arith.constant 0 : index
    %c0_81 = arith.constant 0 : index
    %103 = vector.load %arg5[%c0_79, %c0_80, %c0_81] : memref<1x128x32xf32, #tpu.memory_space<vmem>>, vector<1x128x32xf32>
    %104 = vector.shape_cast %103 : vector<1x128x32xf32> to vector<128x32xf32>
    %105 = vector.shape_cast %102 : vector<128x32xf32> to vector<1x128x32xf32>
    tpu.vector_store %arg5[%c0_79, %c0_80, %c0_81], %105 {strides = array<i32>} : memref<1x128x32xf32, #tpu.memory_space<vmem>>, vector<1x128x32xf32>,
    return
  }
  func.func @transform_0(%arg0: i32, %arg1: i32) -> (i32, i32, i32, i32) {
    %c0_i32 = arith.constant 0 : i32
    %c0_i32_0 = arith.constant 0 : i32
    %c0_i32_1 = arith.constant 0 : i32
    %c0_i32_2 = arith.constant 0 : i32
    return %arg0, %c0_i32, %c0_i32_0, %c0_i32_1 : i32, i32, i32, i32
  }
  func.func @transform_1(%arg0: i32, %arg1: i32) -> (i32, i32, i32) {
    %c0_i32 = arith.constant 0 : i32
    %c0_i32_0 = arith.constant 0 : i32
    %c0_i32_1 = arith.constant 0 : i32
    %c0_i32_2 = arith.constant 0 : i32
    return %c0_i32, %c0_i32_0, %c0_i32_1 : i32, i32, i32
  }
  func.func @transform_2(%arg0: i32, %arg1: i32) -> (i32, i32) {
    %c0_i32 = arith.constant 0 : i32
    %c0_i32_0 = arith.constant 0 : i32
    %c0_i32_1 = arith.constant 0 : i32
    return %c0_i32, %c0_i32_0 : i32, i32
  }
  func.func @transform_3(%arg0: i32, %arg1: i32) -> (i32, i32, i32) {
    %c0_i32 = arith.constant 0 : i32
    %c0_i32_0 = arith.constant 0 : i32
    return %arg0, %arg1, %c0_i32 : i32, i32, i32
  }
}

</mosaic_0001>

<bundles_post_ra>
// kernel: tpu_custom_call.1
= control target key start
LH: loop header
LB: loop body
LE: loop exit
PB: predicated region body
PF: predicated region fallthrough
CT: control target
= control target key end

     0   :  { %s2803_s12 = smov 0   ;;  %s2805_s13 = smov 0   ;;  %s3652_s0 = inlined_call_operand.vmem [shape: bf16[2,18,18,8], index: 0, kind: input, shape index: {}]   ;;  %s3653_s1 = inlined_call_operand.vmem [shape: bf16[9,8,32], index: 1, kind: input, shape index: {}]   ;;  %s3654_s2 = inlined_call_operand.vmem [shape: f32[1,32], index: 2, kind: input, shape index: {}]   ;;  %s3655_s3 = inlined_call_operand.vmem [shape: f32[2,256,32], index: 3, kind: output, shape index: {}]  }
   0x1   :  { %s2807_s14 = smov 0   ;;  %s2809_s15 = smov 0  }
   0x2   :  { %s2811_s16 = smov 0  }
   0x3 LB: > { %s22_s17 = sadd.s32 1, %s2773_s14  ;;  %s25_s18 = sadd.s32 1, %s2777_s15  ;;  %s2781_s16 = sphi %s2811_s16, %s13_s16   ;;  %s2777_s15 = sphi %s2809_s15, %s3663_s15   ;;  %s2773_s14 = sphi %s2807_s14, %s3662_s14   ;;  %s2769_s13 = sphi %s2805_s13, %s3661_s13   ;;  %s2765_s12 = sphi %s2803_s12, %s3660_s12  }
   0x4   : > { %p23_p0 = scmp.ge.s32.totalorder %s22_s17, 2  ;;  %p2363_p1 = scmp.ge.s32.totalorder %s2781_s16, 1 }
   0x5   : > { %p151_p2 = scmp.lt.s32.totalorder %s2781_s16, 5 }
   0x6   : > { %s3665_s17 = smov (%p23_p0, %s22_s17), 0  ;;  %s3667_s18 = smov (!%p23_p0, %s25_s18), %s2777_s15 }
   0x7   : > { %p152_p3 = pnand %p2363_p1, %p151_p2  ;;  %p27_p4 = scmp.ge.s32.totalorder %s3667_s18, 2 }
   0x8   : > { %p179_p5 = scmp.lt.s32.totalorder (!%p152_p3), %s2769_s13, 1  ;;  %s2673_s23 = smul.u32 (!%p152_p3), 96, %s2765_s12 }
   0x9   : > { %s3669_s18 = smov (%p27_p4, %s3667_s18), 0  ;;  %155 = sbr.rel (%p152_p3) target bundleno = 464 (0x1d0), region = 32 }
   0xe   : > { %v2371_v0 = vld [vmem:[%s3653_s1 + $0x4] sm:$0xf]  ;;  %vm470_vm0 = vcmask 1043456   ;;  %s3671_s13 = smov (!%p179_p5, %s2769_s13), 1  ;;  %v2428_v2 = vld [vmem:[%s3653_s1 + $0x8] sm:$0xf] }
   0xf   : > { %v472_v1 = vsel %vm470_vm0, %v2371_v0, 0  ;;  %v773_v3 = vsel %vm470_vm0, %v2428_v2, 0  ;;  %s2701_s24 = smul.u32 216, %s3671_s13  ;;  %v2455_v4 = vld [vmem:[%s3653_s1 + $0xc] sm:$0xf]  ;;  %vm445_vm3 = vcmask 64512  }
  0x10   : > { %2698 = vmatpush.bf16.msra.mxu1 %v472_v1  ;;  %2699 = vmatpush.bf16.msra.mxu2 %v472_v1  ;;  %v215_v5 = vld [vmem:[%s3653_s1] sm:$0xf]  ;;  %v927_v6 = vsel %vm470_vm0, %v2455_v4, 0  ;;  %v2520_v8 = vld [vmem:[%s3653_s1 + $0x10] sm:$0xf]  ;;  %vm663_vm5 = vcmask 1042432  }
  0x11   : > { %2700 = vmatpush.bf16.msra.mxu3 %v472_v1  ;;  %481 = vmatpush.bf16.msra.mxu0 %v472_v1  ;;  %v588_v7 = vsel %vm470_vm0, %v215_v5, 0  ;;  %s183_s6 = scalar_lea.vmem %s3652_s0, %s2701_s24  ;;  %v1261_v9 = vsel %vm470_vm0, %v2520_v8, 0  ;;  %vm224_vm1 = vsmask.f32 3328  ;;  %vm225_vm2 = vsmask.f32 7440 }
  0x12   : > { %s2862_s7 = scalar_lea.vmem %s183_s6, %s2673_s23  ;;  %vm2890_vm4 = vmor %vm224_vm1, %vm225_vm2  ;;  %vm664_vm6 = vcmask 1046532   ;;  %s2365_s23 = sshll.u32 %s2765_s12, 4  ;;  %vm2248_vm8 = vcmask 261120  }
  0x13   : > { %v203_v10 = vld [vmem:[%s2862_s7 + $0x18] sm:$0xf]  ;;  %v2866_v11 = vld [vmem:[%s2862_s7 + $0x1c] sm:$0xf]  ;;  %v2869_v12 = vld [vmem:[%s2862_s7 + $0x20] sm:$0x1] }
  0x14   : > { %782 = vmatpush.bf16.msrb.mxu2 %v773_v3  ;;  %597 = vmatpush.bf16.msrb.mxu1 %v588_v7  ;;  %v276_v13 = vshrl.u32 %v203_v10, 16  ;;  %v279_v14 = vshll.u32 %v203_v10, 16  ;;  %v285_v15 = vshll.u32 %v2866_v11, 16  ;;  %v289_v16 = vshrl.u32 %v2866_v11, 16  ;;  %v207_v17 = vld [vmem:[%s2862_s7 + $0x30] sm:$0xf]  ;;  %vm2998_vm7 = vmor %vm663_vm5, %vm664_vm6 }
  0x15   : > { %936 = vmatpush.bf16.msrb.mxu3 %v927_v6  ;;  %1270 = vmatpush.bf16.msrb.mxu0 %v1261_v9  ;;  %v295_v18 = vshll.u32 %v2869_v12, 16  ;;  %v2876_v19 = vld [vmem:[%s2862_s7 + $0x34] sm:$0xf]  ;;  %v2879_v20 = vld [vmem:[%s2862_s7 + $0x38] sm:$0x1]  ;;  %v324_v21 = vshrl.u32 %v207_v17, 16 }
  0x16   : > { %v278_v22 = vrot.slane %v276_v13, 4  ;;  %v281_v23 = vrot.slane %v279_v14, 5  ;;  %v287_v24 = vrot.slane %v285_v15, 5  ;;  %v291_v25 = vrot.slane %v289_v16, 4  ;;  %v211_v26 = vld [vmem:[%s2862_s7 + $0x48] sm:$0xf] }
  0x17   : > { %v297_v27 = vrot.slane %v295_v18, 5  ;;  %v326_v28 = vrot.slane %v324_v21, 4  ;;  %v327_v29 = vshll.u32 %v207_v17, 16  ;;  %v333_v30 = vshll.u32 %v2876_v19, 16  ;;  %v2886_v35 = vld [vmem:[%s2862_s7 + $0x4c] sm:$0xf] }
  0x18   : > { %v282_v31 = vor.u32 %v281_v23, %v278_v22  ;;  %v292_v32 = vor.u32 %v291_v25, %v287_v24  ;;  %v337_v33 = vshrl.u32 %v2876_v19, 16  ;;  %v343_v34 = vshll.u32 %v2879_v20, 16  ;;  %v2895_v46 = vld [vmem:[%s2862_s7 + $0x50] sm:$0x1]  ;;  %v199_v54 = vld [vmem:[%s2862_s7] sm:$0xf] }
  0x19   : > { %v329_v37 = vrot.slane %v327_v29, 5  ;;  %v335_v38 = vrot.slane %v333_v30, 5  ;;  %v372_v39 = vshrl.u32 %v211_v26, 16  ;;  %v375_v40 = vshll.u32 %v211_v26, 16  ;;  %v2908_v2 = vld [vmem:[%s2862_s7 + $0x4] sm:$0xf] }
  0x1a   : > { %v283_v41 = vrot.slane %v282_v31, 4  ;;  %v293_v42 = vrot.slane %v292_v32, 4  ;;  %v339_v43 = vrot.slane %v337_v33, 4  ;;  %v345_v44 = vrot.slane %v343_v34, 5  ;;  %v2913_v8 = vld [vmem:[%s2862_s7 + $0x8] sm:$0x1] }
  0x1b   : > { %v330_v45 = vor.u32 %v329_v37, %v326_v28  ;;  %v374_v47 = vrot.slane %v372_v39, 4  ;;  %v377_v48 = vrot.slane %v375_v40, 5  ;;  %v381_v49 = vshll.u32 %v2886_v35, 16  ;;  %v205_v15 = vld [vmem:[%s2862_s7 + $0x24] sm:$0xf]  ;;  %p187_p6 = scmp.lt.s32.totalorder %s2365_s23, 31 }
  0x1c   : > { %v288_v50 = vsel %vm2890_vm4, %v283_v41, %v287_v24  ;;  %v298_v51 = vsel %vm2890_vm4, %v293_v42, %v297_v27  ;;  %v340_v52 = vor.u32 %v339_v43, %v335_v38  ;;  %v385_v53 = vshrl.u32 %v2886_v35, 16  ;;  %v2924_v26 = vld [vmem:[%s2862_s7 + $0x28] sm:$0xf]  ;;  %v2929_v30 = vld [vmem:[%s2862_s7 + $0x2c] sm:$0x1]  ;;  %s2366_s24 = sshll.u32 %s3671_s13, 5 }
  0x1d   : > { %v425_v55 = vunpack.c.l.b16 %v288_v50  ;;  %v426_v56 = vunpack.c.l.b16 %v298_v51  ;;  %v331_v57 = vrot.slane %v330_v45, 4  ;;  %v378_v58 = vor.u32 %v377_v48, %v374_v47  ;;  %v2937_v51 = vld [vmem:[%s2862_s7 + $0x40] sm:$0xf]  ;;  %s3673_s23 = smov (!%p187_p6, %s2365_s23), 31 }
  0x1e   : > { %v341_v59 = vrot.slane %v340_v52, 4  ;;  %v383_v60 = vrot.slane %v381_v49, 5  ;;  %v387_v61 = vrot.slane %v385_v53, 4  ;;  %v391_v62 = vshll.u32 %v2895_v46, 16  ;;  %s190_s25 = sadd.s32 %s2366_s24, %s3673_s23 }
  0x1f   : > { %v439_v63 = vpack.c.b16 %v426_v56, %v425_v55  ;;  %v336_v0 = vsel %vm2890_vm4, %v331_v57, %v335_v38  ;;  %v379_v1 = vrot.slane %v378_v58, 4  ;;  %v228_v3 = vshrl.u32 %v199_v54, 16  ;;  %v209_v38 = vld [vmem:[%s2862_s7 + $0x3c] sm:$0xf]  ;;  %v2943_v56 = vld [vmem:[%s2862_s7 + $0x44] sm:$0x1] }
  0x20   : > { %v346_v4 = vsel %vm2890_vm4, %v341_v59, %v345_v44  ;;  %v429_v5 = vunpack.c.l.b16 %v336_v0  ;;  %v388_v6 = vor.u32 %v387_v61, %v383_v60  ;;  %v393_v7 = vrot.slane %v391_v62, 5  ;;  %v213_v58 = vld [vmem:[%s2862_s7 + $0x54] sm:$0xf]  ;;  %s2367_s12 = sshll.u32 %s190_s25, 3 }
  0x21   : > { %2374 = vmatmul.msk.bf16.vlgmr.msra.gmra.mxu1 %vm445_vm3, %v439_v63  ;;  %v430_v9 = vunpack.c.l.b16 %v346_v4  ;;  %v384_v10 = vsel %vm2890_vm4, %v379_v1, %v383_v60  ;;  %v230_v13 = vrot.slane %v228_v3, 4  ;;  %v231_v14 = vshll.u32 %v199_v54, 16  ;;  %s3573_s29 = scalar_lea.vmem %s3655_s3, %s2367_s12 }
  0x22   : > { %v389_v16 = vrot.slane %v388_v6, 4  ;;  %v433_v17 = vunpack.c.l.b16 %v384_v10  ;;  %v237_v18 = vshll.u32 %v2908_v2, 16  ;;  %v241_v21 = vshrl.u32 %v2908_v2, 16 }
  0x23   : > { %v441_v22 = vpack.c.b16 %v430_v9, %v429_v5  ;;  %v233_v23 = vrot.slane %v231_v14, 5  ;;  %v247_v24 = vshll.u32 %v2913_v8, 16  ;;  %v671_v25 = vrot.slane %v2913_v8, 5 }
  0x24   : > { %v394_v27 = vsel %vm2890_vm4, %v389_v16, %v393_v7  ;;  %v239_v28 = vrot.slane %v237_v18, 5  ;;  %v243_v29 = vrot.slane %v241_v21, 4  ;;  %v300_v31 = vshrl.u32 %v205_v15, 16  ;;  %v2957_v16 = vld [vmem:[%s2862_s7 + $0x5c] sm:$0x1] }
  0x25   : > { %2376 = vmatmul.msk.bf16.vlgmr.msra.gmra.mxu2 %vm445_vm3, %v441_v22  ;;  %v434_v32 = vunpack.c.l.b16 %v394_v27  ;;  %v234_v33 = vor.u32 %v233_v23, %v230_v13  ;;  %v249_v34 = vrot.slane %v247_v24, 5  ;;  %v303_v37 = vshll.u32 %v205_v15, 16  ;;  %v2954_v15 = vld [vmem:[%s2862_s7 + $0x58] sm:$0xf]  ;;  %v201_v23 = vld [vmem:[%s2862_s7 + $0xc] sm:$0xf] }
  0x26   : > { %v244_v39 = vor.u32 %v243_v29, %v239_v28  ;;  %v302_v40 = vrot.slane %v300_v31, 4  ;;  %v309_v41 = vshll.u32 %v2924_v26, 16  ;;  %v313_v42 = vshrl.u32 %v2924_v26, 16 }
  0x27   : > { %v443_v43 = vpack.c.b16 %v434_v32, %v433_v17  ;;  %v235_v44 = vrot.slane %v234_v33, 4  ;;  %v305_v45 = vrot.slane %v303_v37, 5  ;;  %v319_v47 = vshll.u32 %v2929_v30, 16 }
  0x28   : > { %v245_v48 = vrot.slane %v244_v39, 4  ;;  %v311_v49 = vrot.slane %v309_v41, 5  ;;  %v315_v50 = vrot.slane %v313_v42, 4  ;;  %v348_v52 = vshrl.u32 %v209_v38, 16 }
  0x29   : > { %2378 = vmatmul.msk.bf16.vlgmr.msra.gmra.mxu3 %vm445_vm3, %v443_v43  ;;  %v240_v53 = vsel %vm2890_vm4, %v235_v44, %v239_v28  ;;  %v306_v54 = vor.u32 %v305_v45, %v302_v40  ;;  %v321_v55 = vrot.slane %v319_v47, 5  ;;  %v351_v57 = vshll.u32 %v209_v38, 16  ;;  %v2969_v40 = vld [vmem:[%s2862_s7 + $0x10] sm:$0xf]  ;;  %v2972_v47 = vld [vmem:[%s2862_s7 + $0x14] sm:$0x1] }
  0x2a   : > { %v250_v59 = vsel %vm2890_vm4, %v245_v48, %v249_v34  ;;  %v421_v60 = vunpack.c.l.b16 %v240_v53  ;;  %v316_v61 = vor.u32 %v315_v50, %v311_v49  ;;  %v350_v62 = vrot.slane %v348_v52, 4 }
  0x2b   : > { %v422_v63 = vunpack.c.l.b16 %v250_v59  ;;  %v307_v0 = vrot.slane %v306_v54, 4  ;;  %v353_v1 = vrot.slane %v351_v57, 5  ;;  %v357_v3 = vshll.u32 %v2937_v51, 16 }
  0x2c   : > { %v317_v4 = vrot.slane %v316_v61, 4  ;;  %v361_v5 = vshrl.u32 %v2937_v51, 16  ;;  %v367_v6 = vshll.u32 %v2943_v56, 16  ;;  %v396_v7 = vshrl.u32 %v213_v58, 16 }
  0x2d   : > { %v437_v9 = vpack.c.b16 %v422_v63, %v421_v60  ;;  %v312_v10 = vsel %vm2890_vm4, %v307_v0, %v311_v49  ;;  %v354_v13 = vor.u32 %v353_v1, %v350_v62  ;;  %v359_v14 = vrot.slane %v357_v3, 5  ;;  %v639_v1 = vld [vmem:[%s2862_s7] sm:$0xe] }
  0x2e   : > { %v322_v17 = vsel %vm2890_vm4, %v317_v4, %v321_v55  ;;  %v427_v18 = vunpack.c.l.b16 %v312_v10  ;;  %v363_v21 = vrot.slane %v361_v5, 4  ;;  %v369_v22 = vrot.slane %v367_v6, 5 }
  0x2f   : > { %2372 = vmatmul.msk.bf16.vlgmr.msra.gmra.mxu0 %vm445_vm3, %v437_v9  ;;  %v428_v24 = vunpack.c.l.b16 %v322_v17  ;;  %v355_v27 = vrot.slane %v354_v13, 4  ;;  %v398_v28 = vrot.slane %v396_v7, 4  ;;  %v399_v29 = vshll.u32 %v213_v58, 16  ;;  %v2572_v7 = vld [vmem:[%s3653_s1 + $0x18] sm:$0xf] }
  0x30   : > { %v364_v31 = vor.u32 %v363_v21, %v359_v14  ;;  %v405_v32 = vshll.u32 %v2954_v15, 16  ;;  %v409_v33 = vshrl.u32 %v2954_v15, 16  ;;  %v415_v34 = vshll.u32 %v2957_v16, 16  ;;  %v2496_v9 = vld [vmem:[%s2862_s7 + $0xc] sm:$0xf] }
  0x31   : > { %v440_v37 = vpack.c.b16 %v428_v24, %v427_v18  ;;  %v360_v38 = vsel %vm2890_vm4, %v355_v27, %v359_v14  ;;  %v401_v39 = vrot.slane %v399_v29, 5  ;;  %v252_v41 = vshrl.u32 %v201_v23, 16  ;;  %v2993_v27 = vld [vmem:[%s2862_s7 + $0x10] sm:$0xf] }
  0x32   : > { %v365_v42 = vrot.slane %v364_v31, 4  ;;  %v431_v43 = vunpack.c.l.b16 %v360_v38  ;;  %v407_v44 = vrot.slane %v405_v32, 5  ;;  %v411_v45 = vrot.slane %v409_v33, 4 }
  0x33   : > { %2375 = vmatmul.msk.bf16.gmra.mxu1 %vm445_vm3, %v440_v37  ;;  %v402_v48 = vor.u32 %v401_v39, %v398_v28  ;;  %v417_v49 = vrot.slane %v415_v34, 5  ;;  %v254_v50 = vrot.slane %v252_v41, 4  ;;  %v255_v52 = vshll.u32 %v201_v23, 16  ;;  %v3003_v37 = vld [vmem:[%s2862_s7 + $0x14] sm:$0x1] }
  0x34   : > { %v370_v53 = vsel %vm2890_vm4, %v365_v42, %v369_v22  ;;  %v412_v54 = vor.u32 %v411_v45, %v407_v44  ;;  %v261_v55 = vshll.u32 %v2969_v40, 16  ;;  %v265_v57 = vshrl.u32 %v2969_v40, 16  ;;  %v2637_v41 = vld [vmem:[%s3653_s1 + $0x1c] sm:$0xf]  ;;  %v2545_v45 = vld [vmem:[%s3653_s1 + $0x14] sm:$0xf] }
  0x35   : > { %v432_v58 = vunpack.c.l.b16 %v370_v53  ;;  %v403_v59 = vrot.slane %v402_v48, 4  ;;  %v257_v60 = vrot.slane %v255_v52, 5  ;;  %v271_v61 = vshll.u32 %v2972_v47, 16  ;;  %v2662_v53 = vld [vmem:[%s3653_s1 + $0x20] sm:$0xf] }
  0x36   : > { %v413_v62 = vrot.slane %v412_v54, 4  ;;  %v263_v63 = vrot.slane %v261_v55, 5  ;;  %v267_v0 = vrot.slane %v265_v57, 4  ;;  %v2420_v21 = vrot.slane %v639_v1, 9  ;;  %v2674_v55 = vld [vmem:[%s2862_s7] sm:$0xff] }
  0x37   : > { %v442_v3 = vpack.c.b16 %v432_v58, %v431_v43  ;;  %v408_v4 = vsel %vm2890_vm4, %v403_v59, %v407_v44  ;;  %v258_v5 = vor.u32 %v257_v60, %v254_v50  ;;  %v273_v6 = vrot.slane %v271_v61, 5 }
  0x38   : > { %v418_v10 = vsel %vm2890_vm4, %v413_v62, %v417_v49  ;;  %v435_v13 = vunpack.c.l.b16 %v408_v4  ;;  %v268_v14 = vor.u32 %v267_v0, %v263_v63  ;;  %v668_v22 = vrot.slane %v2908_v2, 5  ;;  %v3034_v4 = vld [vmem:[%s2862_s7 + $0x1c] sm:$0xf] }
  0x39   : > { %2377 = vmatmul.msk.bf16.gmra.mxu2 %vm445_vm3, %v442_v3  ;;  %v436_v17 = vunpack.c.l.b16 %v418_v10  ;;  %v259_v18 = vrot.slane %v258_v5, 4  ;;  %v1621_v24 = vsel %vm470_vm0, %v2572_v7, 0  ;;  %v1019_v28 = vshrl.u32 %v2496_v9, 16  ;;  %v2499_v3 = vld [vmem:[%s2862_s7 + $0x18] sm:$0xf] }
  0x3a   : > { %v269_v23 = vrot.slane %v268_v14, 4  ;;  %v1022_v29 = vshll.u32 %v2496_v9, 16  ;;  %v670_v34 = vrot.slane %v668_v22, 4  ;;  %1630 = vmatpush.bf16.msra.mxu2 %v1621_v24  ;;  %v1028_v44 = vshll.u32 %v2993_v27, 16  ;;  %v641_v5 = vld [vmem:[%s2862_s7 + $0x18] sm:$0xe] }
  0x3b   : > { %v444_v31 = vpack.c.b16 %v436_v17, %v435_v13  ;;  %v264_v32 = vsel %vm2890_vm4, %v259_v18, %v263_v63  ;;  %v1021_v39 = vrot.slane %v1019_v28, 4  ;;  %v669_v48 = vsel %vm2998_vm7, %v2420_v21, %v668_v22  ;;  %v640_v7 = vld [vmem:[%s2862_s7 + $0xc] sm:$0xe] }
  0x3c   : > { %v274_v2 = vsel %vm2890_vm4, %v269_v23, %v273_v6  ;;  %v423_v38 = vunpack.c.l.b16 %v264_v32  ;;  %v1024_v43 = vrot.slane %v1022_v29, 5  ;;  %v672_v49 = vsel %vm2998_vm7, %v670_v34, %v671_v25  ;;  %v2682_v34 = vld [vmem:[%s2862_s7 + $0xc] sm:$0xff] }
  0x3d   : > { %2379 = vmatmul.msk.bf16.gmra.mxu3 %vm445_vm3, %v444_v31  ;;  %v424_v42 = vunpack.c.l.b16 %v274_v2  ;;  %v1032_v50 = vshrl.u32 %v2993_v27, 16  ;;  %v1038_v52 = vshll.u32 %v3003_v37, 16  ;;  %v1030_v58 = vrot.slane %v1028_v44, 5 }
  0x3e   : > { %v1025_v57 = vor.u32 %v1024_v43, %v1021_v39  ;;  %v1955_v59 = vsel %vm470_vm0, %v2637_v41, 0  ;;  %v1467_v25 = vsel %vm470_vm0, %v2545_v45, 0  ;;  %v724_v60 = vunpack.c.l.b16 %v669_v48 }
  0x3f   : > { %v438_v54 = vpack.c.b16 %v424_v42, %v423_v38  ;;  %v1034_v8 = vrot.slane %v1032_v50, 4  ;;  %1964 = vmatpush.bf16.msra.mxu3 %v1955_v59  ;;  %v725_v61 = vunpack.c.l.b16 %v672_v49  ;;  %1476 = vmatpush.bf16.msra.mxu1 %v1467_v25  ;;  %v2161_v63 = vsel %vm470_vm0, %v2662_v53, 0 }
  0x40   : > { %v1026_v62 = vrot.slane %v1025_v57, 4  ;;  %v1040_v1 = vrot.slane %v1038_v52, 5  ;;  %2170 = vmatpush.bf16.msra.mxu0 %v2161_v63  ;;  %v675_v9 = vrot.slane %v2969_v40, 5  ;;  %v1043_v14 = vshrl.u32 %v2499_v3, 16  ;;  %v642_v63 = vld [vmem:[%s2862_s7 + $0x24] sm:$0xe] }
  0x41   : > { %2373 = vmatmul.msk.bf16.gmra.mxu0 %vm445_vm3, %v438_v54  ;;  %v1035_v0 = vor.u32 %v1034_v8, %v1030_v58  ;;  %v740_v10 = vpack.c.b16 %v725_v61, %v724_v60  ;;  %v1046_v17 = vshll.u32 %v2499_v3, 16  ;;  %v1052_v21 = vshll.u32 %v3034_v4, 16  ;;  %v2502_v61 = vld [vmem:[%s2862_s7 + $0x24] sm:$0xf] }
  0x42   : > { %v1031_v13 = vsel %vm2890_vm4, %v1026_v62, %v1030_v58  ;;  %v1056_v22 = vshrl.u32 %v3034_v4, 16  ;;  %v2422_v23 = vrot.slane %v641_v5, 9  ;;  %v2421_v24 = vrot.slane %v640_v7, 9  ;;  %v3068_v62 = vld [vmem:[%s2862_s7 + $0x28] sm:$0xf] }
  0x43   : > { %2412 = vmatmul.msk.bf16.vlgmr.msrb.gmra.mxu1 %vm445_vm3, %v2674_v55  ;;  %v1036_v6 = vrot.slane %v1035_v0, 4  ;;  %v682_v28 = vrot.slane %v2866_v11, 5  ;;  %v1212_v40 = vunpack.c.l.b16 %v1031_v13  ;;  %v677_v29 = vrot.slane %v675_v9, 4  ;;  %v3053_v11 = vld [vmem:[%s2862_s7 + $0x20] sm:$0x1]  ;;  %v2675_v55 = vld [vmem:[%s2862_s7 + $0xc] sm:$0xff] }
  0x44   : > { %v678_v31 = vrot.slane %v2972_v47, 5  ;;  %v685_v32 = vrot.slane %v2869_v12, 5  ;;  %v1045_v38 = vrot.slane %v1043_v14, 4  ;;  %v1048_v39 = vrot.slane %v1046_v17, 5 }
  0x45   : > { %v1041_v18 = vsel %vm2890_vm4, %v1036_v6, %v1040_v1  ;;  %v683_v41 = vsel %vm2998_vm7, %v2422_v23, %v682_v28  ;;  %v1054_v42 = vrot.slane %v1052_v21, 5  ;;  %v1058_v43 = vrot.slane %v1056_v22, 4  ;;  %v2683_v22 = vld [vmem:[%s2862_s7 + $0x18] sm:$0xff] }
  0x46   : > { %v1213_v2 = vunpack.c.l.b16 %v1041_v18  ;;  %v684_v44 = vrot.slane %v682_v28, 4  ;;  %v728_v45 = vunpack.c.l.b16 %v683_v41  ;;  %v676_v47 = vsel %vm2998_vm7, %v2421_v24, %v675_v9 }
  0x47   : > { %v679_v49 = vsel %vm2998_vm7, %v677_v29, %v678_v31  ;;  %v1049_v50 = vor.u32 %v1048_v39, %v1045_v38  ;;  %v1059_v53 = vor.u32 %v1058_v43, %v1054_v42  ;;  %v1062_v54 = vshll.u32 %v3053_v11, 16  ;;  %v2505_v43 = vld [vmem:[%s2862_s7 + $0x30] sm:$0xf] }
  0x48   : > { %v686_v12 = vsel %vm2998_vm7, %v684_v44, %v685_v32  ;;  %v1228_v48 = vpack.c.b16 %v1213_v2, %v1212_v40  ;;  %v726_v58 = vunpack.c.l.b16 %v676_v47  ;;  %v727_v59 = vunpack.c.l.b16 %v679_v49  ;;  %v3094_v44 = vld [vmem:[%s2862_s7 + $0x34] sm:$0xf] }
  0x49   : > { %2429 = vmatmul.msk.bf16.vlgmr.msrb.gmra.mxu2 %vm445_vm3, %v740_v10  ;;  %v729_v52 = vunpack.c.l.b16 %v686_v12  ;;  %v1050_v8 = vrot.slane %v1049_v50, 4  ;;  %v1060_v25 = vrot.slane %v1059_v53, 4  ;;  %v1064_v60 = vrot.slane %v1062_v54, 5 }
  0x4a   : > { %v689_v0 = vrot.slane %v2924_v26, 5  ;;  %v692_v1 = vrot.slane %v2929_v30, 5  ;;  %v741_v3 = vpack.c.b16 %v727_v59, %v726_v58  ;;  %v2423_v5 = vrot.slane %v642_v63, 9  ;;  %v3106_v63 = vld [vmem:[%s2862_s7 + $0x38] sm:$0x1] }
  0x4b   : > { %v742_v57 = vpack.c.b16 %v729_v52, %v728_v45  ;;  %v1055_v6 = vsel %vm2890_vm4, %v1050_v8, %v1054_v42  ;;  %v1067_v7 = vshrl.u32 %v2502_v61, 16  ;;  %v1070_v9 = vshll.u32 %v2502_v61, 16  ;;  %v2676_v42 = vld [vmem:[%s2862_s7 + $0x18] sm:$0xff] }
  0x4c   : > { %v691_v10 = vrot.slane %v689_v0, 4  ;;  %v1065_v13 = vsel %vm2890_vm4, %v1060_v25, %v1064_v60  ;;  %v1076_v14 = vshll.u32 %v3068_v62, 16  ;;  %v1080_v17 = vshrl.u32 %v3068_v62, 16  ;;  %v2684_v25 = vld [vmem:[%s2862_s7 + $0x24] sm:$0xff] }
  0x4d   : > { %2488 = vmatmul.msk.bf16.vlgmr.msrb.gmra.mxu3 %vm445_vm3, %v2682_v34  ;;  %v690_v26 = vsel %vm2998_vm7, %v2423_v5, %v689_v0  ;;  %v1214_v23 = vunpack.c.l.b16 %v1055_v6  ;;  %v1215_v24 = vunpack.c.l.b16 %v1065_v13  ;;  %v1069_v28 = vrot.slane %v1067_v7, 4  ;;  %v3086_v34 = vld [vmem:[%s2862_s7 + $0x2c] sm:$0x1]  ;;  %v2677_v6 = vld [vmem:[%s2862_s7 + $0x24] sm:$0xff]  ;;  %v3114_v13 = vld [vmem:[%s2862_s7 + $0x40] sm:$0xf] }
  0x4e   : > { %v693_v30 = vsel %vm2998_vm7, %v691_v10, %v692_v1  ;;  %v730_v18 = vunpack.c.l.b16 %v690_v26  ;;  %v1072_v40 = vrot.slane %v1070_v9, 5  ;;  %v1078_v29 = vrot.slane %v1076_v14, 5  ;;  %v643_v26 = vld [vmem:[%s2862_s7 + $0x30] sm:$0xe] }
  0x4f   : > { %v731_v21 = vunpack.c.l.b16 %v693_v30  ;;  %v1082_v31 = vrot.slane %v1080_v17, 4  ;;  %v1229_v2 = vpack.c.b16 %v1215_v24, %v1214_v23  ;;  %v1086_v41 = vshll.u32 %v3086_v34, 16 }
  0x50   : > { %v1073_v38 = vor.u32 %v1072_v40, %v1069_v28  ;;  %v1094_v49 = vshll.u32 %v2505_v43, 16  ;;  %v1100_v50 = vshll.u32 %v3094_v44, 16  ;;  %v1104_v52 = vshrl.u32 %v3094_v44, 16 }
  0x51   : > { %2521 = vmatmul.msk.bf16.vlgmr.msrb.gmra.mxu0 %vm445_vm3, %v1228_v48  ;;  %v743_v32 = vpack.c.b16 %v731_v21, %v730_v18  ;;  %v1083_v39 = vor.u32 %v1082_v31, %v1078_v29  ;;  %v1088_v12 = vrot.slane %v1086_v41, 5  ;;  %v1091_v48 = vshrl.u32 %v2505_v43, 16  ;;  %v3129_v43 = vld [vmem:[%s2862_s7 + $0x44] sm:$0x1] }
  0x52   : > { %v1074_v45 = vrot.slane %v1073_v38, 4  ;;  %v1096_v58 = vrot.slane %v1094_v49, 5  ;;  %v1102_v59 = vrot.slane %v1100_v50, 5  ;;  %v1106_v8 = vrot.slane %v1104_v52, 4  ;;  %v2678_v49 = vld [vmem:[%s2862_s7 + $0x30] sm:$0xff] }
  0x53   : > { %2413 = vmatmul.msk.bf16.gmra.mxu1 %vm445_vm3, %v2675_v55  ;;  %v1084_v47 = vrot.slane %v1083_v39, 4  ;;  %v1093_v55 = vrot.slane %v1091_v48, 4  ;;  %v1124_v21 = vshll.u32 %v3114_v13, 16  ;;  %v696_v23 = vrot.slane %v2876_v19, 5 }
  0x54   : > { %v1079_v53 = vsel %vm2890_vm4, %v1074_v45, %v1078_v29  ;;  %v1107_v1 = vor.u32 %v1106_v8, %v1102_v59  ;;  %v2424_v40 = vrot.slane %v643_v26, 9  ;;  %v2685_v29 = vld [vmem:[%s2862_s7 + $0x30] sm:$0xff] }
  0x55   : > { %v1089_v54 = vsel %vm2890_vm4, %v1084_v47, %v1088_v12  ;;  %v1216_v60 = vunpack.c.l.b16 %v1079_v53  ;;  %v1097_v0 = vor.u32 %v1096_v58, %v1093_v55  ;;  %v1126_v38 = vrot.slane %v1124_v21, 5  ;;  %v2511_v55 = vld [vmem:[%s2862_s7 + $0x48] sm:$0xf]  ;;  %v3142_v58 = vld [vmem:[%s2862_s7 + $0x4c] sm:$0xf] }
  0x56   : > { %v1217_v61 = vunpack.c.l.b16 %v1089_v54  ;;  %v1108_v9 = vrot.slane %v1107_v1, 4  ;;  %v698_v41 = vrot.slane %v696_v23, 4  ;;  %v697_v19 = vsel %vm2998_vm7, %v2424_v40, %v696_v23  ;;  %v2679_v40 = vld [vmem:[%s2862_s7 + $0x3c] sm:$0xff] }
  0x57   : > { %v1098_v7 = vrot.slane %v1097_v0, 4  ;;  %v1134_v12 = vshll.u32 %v3129_v43, 16  ;;  %v1139_v0 = vshrl.u32 %v2511_v55, 16  ;;  %v1142_v1 = vshll.u32 %v2511_v55, 16 }
  0x58   : > { %v1230_v5 = vpack.c.b16 %v1217_v61, %v1216_v60  ;;  %v703_v60 = vrot.slane %v2937_v51, 5  ;;  %v644_v61 = vld [vmem:[%s2862_s7 + $0x3c] sm:$0xe] }
  0x59   : > { %2430 = vmatmul.msk.bf16.gmra.mxu2 %vm445_vm3, %v741_v3  ;;  %v1110_v3 = vshll.u32 %v3106_v63, 16  ;;  %v1103_v14 = vsel %vm2890_vm4, %v1098_v7, %v1102_v59  ;;  %v1136_v54 = vrot.slane %v1134_v12, 5  ;;  %v2686_v7 = vld [vmem:[%s2862_s7 + $0x3c] sm:$0xff]  ;;  %v1144_v51 = vrot.slane %v1142_v1, 5 }
  0x5a   : > { %v1218_v24 = vunpack.c.l.b16 %v1103_v14  ;;  %v706_v14 = vrot.slane %v2943_v56, 5  ;;  %v3183_v1 = vld [vmem:[%s2862_s7 + $0x5c] sm:$0x1] }
  0x5b   : > { %v1112_v10 = vrot.slane %v1110_v3, 5  ;;  %v1148_v3 = vshll.u32 %v3142_v58, 16 }
  0x5d   : > { %2489 = vmatmul.msk.bf16.gmra.mxu3 %vm445_vm3, %v2683_v22  ;;  %v1113_v17 = vsel %vm2890_vm4, %v1108_v9, %v1112_v10  ;;  %v1128_v22 = vshrl.u32 %v3114_v13, 16  ;;  %v2425_v10 = vrot.slane %v644_v61, 9  ;;  %v1150_v26 = vrot.slane %v1148_v3, 5 }
  0x5e   : > { %v1219_v28 = vunpack.c.l.b16 %v1113_v17  ;;  %v1141_v17 = vrot.slane %v1139_v0, 4  ;;  %v713_v61 = vrot.slane %v2895_v46, 5  ;;  %v1182_v46 = vshll.u32 %v3183_v1, 16 }
  0x5f   : > { %v1130_v39 = vrot.slane %v1128_v22, 4  ;;  %v704_v22 = vsel %vm2998_vm7, %v2425_v10, %v703_v60  ;;  %v2680_v10 = vld [vmem:[%s2862_s7 + $0x48] sm:$0xff] }
  0x60   : > { %v1231_v45 = vpack.c.b16 %v1219_v28, %v1218_v24  ;;  %v1145_v24 = vor.u32 %v1144_v51, %v1141_v17 }
  0x61   : > { %2522 = vmatmul.msk.bf16.gmra.mxu0 %vm445_vm3, %v1229_v2  ;;  %v1131_v47 = vor.u32 %v1130_v39, %v1126_v38 }
  0x63   : > { %2414 = vmatmul.msk.bf16.gmra.mxu1 %vm445_vm3, %v2676_v42  ;;  %v699_v42 = vrot.slane %v2879_v20, 5  ;;  %v732_v20 = vunpack.c.l.b16 %v697_v19  ;;  %v1132_v53 = vrot.slane %v1131_v47, 4 }
  0x65   : > { %v700_v48 = vsel %vm2998_vm7, %v698_v41, %v699_v42  ;;  %v3168_v42 = vld [vmem:[%s2862_s7 + $0x58] sm:$0xf] }
  0x66   : > { %v733_v50 = vunpack.c.l.b16 %v700_v48  ;;  %v1172_v47 = vshll.u32 %v3168_v42, 16 }
  0x68   : > { %v744_v59 = vpack.c.b16 %v733_v50, %v732_v20  ;;  %v1176_v20 = vshrl.u32 %v3168_v42, 16  ;;  %v645_v50 = vld [vmem:[%s2862_s7 + $0x48] sm:$0xe] }
  0x69   : > { %2431 = vmatmul.msk.bf16.gmra.mxu2 %vm445_vm3, %v742_v57  ;;  %v2508_v57 = vld [vmem:[%s2862_s7 + $0x3c] sm:$0xf] }
  0x6a   : > { %v1115_v30 = vshrl.u32 %v2508_v57, 16  ;;  %v1118_v18 = vshll.u32 %v2508_v57, 16  ;;  %v705_v57 = vrot.slane %v703_v60, 4  ;;  %v1178_v0 = vrot.slane %v1176_v20, 4 }
  0x6c   : > { %v1117_v31 = vrot.slane %v1115_v30, 4  ;;  %v1120_v2 = vrot.slane %v1118_v18, 5  ;;  %v3156_v18 = vld [vmem:[%s2862_s7 + $0x50] sm:$0x1]  ;;  %v707_v23 = vsel %vm2998_vm7, %v705_v57, %v706_v14 }
  0x6d   : > { %2490 = vmatmul.msk.bf16.gmra.mxu3 %vm445_vm3, %v2684_v25  ;;  %v1137_v25 = vsel %vm2890_vm4, %v1132_v53, %v1136_v54  ;;  %v1158_v56 = vshll.u32 %v3156_v18, 16  ;;  %v2687_v54 = vld [vmem:[%s2862_s7 + $0x48] sm:$0xff] }
  0x6e   : > { %v1221_v9 = vunpack.c.l.b16 %v1137_v25  ;;  %v2426_v25 = vrot.slane %v645_v50, 9  ;;  %v3216_v50 = vld [vmem:[%s2862_s7 + $0x68] sm:$0x1] }
  0x6f   : > { %v1160_v41 = vrot.slane %v1158_v56, 5 }
  0x71   : > { %2523 = vmatmul.msk.bf16.gmra.mxu0 %vm445_vm3, %v1230_v5  ;;  %v1152_v5 = vshrl.u32 %v3142_v58, 16 }
  0x73   : > { %2415 = vmatmul.msk.bf16.gmra.mxu1 %vm445_vm3, %v2677_v6  ;;  %v1154_v30 = vrot.slane %v1152_v5, 4 }
  0x75   : > { %v1155_v28 = vor.u32 %v1154_v30, %v1150_v26  ;;  %v2517_v30 = vld [vmem:[%s2862_s7 + $0x60] sm:$0xf] }
  0x77   : > { %v1156_v39 = vrot.slane %v1155_v28, 4  ;;  %v1190_v28 = vshll.u32 %v2517_v30, 16 }
  0x79   : > { %2432 = vmatmul.msk.bf16.gmra.mxu2 %vm445_vm3, %v743_v32  ;;  %v1121_v32 = vor.u32 %v1120_v2, %v1117_v31  ;;  %v735_v31 = vunpack.c.l.b16 %v707_v23  ;;  %v2514_v2 = vld [vmem:[%s2862_s7 + $0x54] sm:$0xf]  ;;  %v1161_v48 = vsel %vm2890_vm4, %v1156_v39, %v1160_v41 }
  0x7a   : > { %v1166_v19 = vshll.u32 %v2514_v2, 16 }
  0x7b   : > { %v1122_v52 = vrot.slane %v1121_v32, 4 }
  0x7c   : > { %v1168_v53 = vrot.slane %v1166_v19, 5 }
  0x7d   : > { %2491 = vmatmul.msk.bf16.gmra.mxu3 %vm445_vm3, %v2685_v29  ;;  %v1127_v8 = vsel %vm2890_vm4, %v1122_v52, %v1126_v38  ;;  %v734_v29 = vunpack.c.l.b16 %v704_v22  ;;  %v1146_v38 = vrot.slane %v1145_v24, 4  ;;  %v1187_v24 = vshrl.u32 %v2517_v30, 16 }
  0x7e   : > { %v1220_v6 = vunpack.c.l.b16 %v1127_v8  ;;  %v1174_v8 = vrot.slane %v1172_v47, 5  ;;  %v1192_v47 = vrot.slane %v1190_v28, 5 }
  0x7f   : > { %v745_v32 = vpack.c.b16 %v735_v31, %v734_v29  ;;  %v1151_v12 = vsel %vm2890_vm4, %v1146_v38, %v1150_v26  ;;  %v1184_v26 = vrot.slane %v1182_v46, 5  ;;  %v717_v31 = vrot.slane %v2954_v15, 5  ;;  %v646_v38 = vld [vmem:[%s2862_s7 + $0x54] sm:$0xe] }
  0x80   : > { %v1232_v21 = vpack.c.b16 %v1221_v9, %v1220_v6  ;;  %v1222_v55 = vunpack.c.l.b16 %v1151_v12  ;;  %v1179_v9 = vor.u32 %v1178_v0, %v1174_v8  ;;  %v720_v15 = vrot.slane %v2957_v16, 5  ;;  %v2681_v0 = vld [vmem:[%s2862_s7 + $0x54] sm:$0xff] }
  0x81   : > { %2524 = vmatmul.msk.bf16.gmra.mxu0 %vm445_vm3, %v1231_v45  ;;  %v1163_v45 = vshrl.u32 %v2514_v2, 16 }
  0x82   : > { %v1180_v51 = vrot.slane %v1179_v9, 4 }
  0x83   : > { %2416 = vmatmul.msk.bf16.gmra.mxu1 %vm445_vm3, %v2678_v49  ;;  %v710_v49 = vrot.slane %v2886_v35, 5  ;;  %v1165_v52 = vrot.slane %v1163_v45, 4  ;;  %v2688_v45 = vld [vmem:[%s2862_s7 + $0x54] sm:$0xff] }
  0x85   : > { %v712_v60 = vrot.slane %v710_v49, 4  ;;  %v1169_v35 = vor.u32 %v1168_v53, %v1165_v52  ;;  %v711_v6 = vsel %vm2998_vm7, %v2426_v25, %v710_v49  ;;  %v719_v49 = vrot.slane %v717_v31, 4 }
  0x86   : > { %v736_v14 = vunpack.c.l.b16 %v711_v6 }
  0x87   : > { %v1170_v57 = vrot.slane %v1169_v35, 4  ;;  %v721_v25 = vsel %vm2998_vm7, %v719_v49, %v720_v15  ;;  %v2689_v49 = vld [vmem:[%s2862_s7 + $0x60] sm:$0xff] }
  0x88   : > { %v739_v46 = vunpack.c.l.b16 %v721_v25 }
  0x89   : > { %2433 = vmatmul.msk.bf16.gmra.mxu2 %vm445_vm3, %v744_v59  ;;  %v1223_v59 = vunpack.c.l.b16 %v1161_v48  ;;  %v1175_v22 = vsel %vm2890_vm4, %v1170_v57, %v1174_v8  ;;  %v2427_v48 = vrot.slane %v646_v38, 9 }
  0x8a   : > { %v1224_v39 = vunpack.c.l.b16 %v1175_v22  ;;  %v1365_v22 = vrot.slane %v3003_v37, 5 }
  0x8b   : > { %v1233_v3 = vpack.c.b16 %v1223_v59, %v1222_v55  ;;  %v2613_v59 = vld [vmem:[%s2862_s7 + $0x18] sm:$0xf]  ;;  %v718_v8 = vsel %vm2998_vm7, %v2427_v48, %v717_v31 }
  0x8c   : > { %v1713_v6 = vshrl.u32 %v2613_v59, 16  ;;  %v738_v9 = vunpack.c.l.b16 %v718_v8 }
  0x8d   : > { %2492 = vmatmul.msk.bf16.gmra.mxu3 %vm445_vm3, %v2686_v7  ;;  %v714_v7 = vsel %vm2998_vm7, %v712_v60, %v713_v61  ;;  %v1206_v60 = vshll.u32 %v3216_v50, 16  ;;  %v3230_v61 = vld [vmem:[%s2862_s7 + $0x1c] sm:$0xf] }
  0x8e   : > { %v737_v17 = vunpack.c.l.b16 %v714_v7  ;;  %v1716_v7 = vshll.u32 %v2613_v59, 16  ;;  %v1722_v57 = vshll.u32 %v3230_v61, 16  ;;  %v1715_v28 = vrot.slane %v1713_v6, 4 }
  0x8f   : > { %v1208_v30 = vrot.slane %v1206_v60, 5  ;;  %v2056_v6 = vrot.slane %v3230_v61, 5 }
  0x90   : > { %v746_v23 = vpack.c.b16 %v737_v17, %v736_v14  ;;  %v1726_v14 = vshrl.u32 %v3230_v61, 16  ;;  %v1724_v31 = vrot.slane %v1722_v57, 5 }
  0x91   : > { %2525 = vmatmul.msk.bf16.gmra.mxu0 %vm445_vm3, %v1232_v21  ;;  %v3197_v21 = vld [vmem:[%s2862_s7 + $0x64] sm:$0xf] }
  0x92   : > { %v1196_v56 = vshll.u32 %v3197_v21, 16  ;;  %v1200_v2 = vshrl.u32 %v3197_v21, 16 }
  0x93   : > { %2417 = vmatmul.msk.bf16.gmra.mxu1 %vm445_vm3, %v2679_v40  ;;  %v1185_v40 = vsel %vm2890_vm4, %v1180_v51, %v1184_v26 }
  0x94   : > { %v1225_v19 = vunpack.c.l.b16 %v1185_v40  ;;  %v1198_v12 = vrot.slane %v1196_v56, 5  ;;  %v1202_v20 = vrot.slane %v1200_v2, 4  ;;  %v1718_v56 = vrot.slane %v1716_v7, 5 }
  0x95   : > { %v747_v40 = vpack.c.b16 %v739_v46, %v738_v9  ;;  %v1728_v2 = vrot.slane %v1726_v14, 4  ;;  %v2616_v46 = vld [vmem:[%s2862_s7 + $0x24] sm:$0xf] }
  0x96   : > { %v1203_v16 = vor.u32 %v1202_v20, %v1198_v12  ;;  %v1719_v48 = vor.u32 %v1718_v56, %v1715_v28  ;;  %v2530_v28 = vld [vmem:[%s2862_s7 + $0x18] sm:$0xe]  ;;  %v1737_v56 = vshrl.u32 %v2616_v46, 16 }
  0x97   : > { %v1729_v20 = vor.u32 %v1728_v2, %v1724_v31 }
  0x98   : > { %v1204_v26 = vrot.slane %v1203_v16, 4  ;;  %v1720_v25 = vrot.slane %v1719_v48, 4 }
  0x99   : > { %2434 = vmatmul.msk.bf16.gmra.mxu2 %vm445_vm3, %v745_v32  ;;  %v1189_v32 = vrot.slane %v1187_v24, 4  ;;  %v1730_v60 = vrot.slane %v1729_v20, 4 }
  0x9a   : > { %v1209_v37 = vsel %vm2890_vm4, %v1204_v26, %v1208_v30  ;;  %v1369_v30 = vrot.slane %v3034_v4, 5 }
  0x9b   : > { %v1193_v55 = vor.u32 %v1192_v47, %v1189_v32 }
  0x9d   : > { %2493 = vmatmul.msk.bf16.gmra.mxu3 %vm445_vm3, %v2687_v54  ;;  %v1234_v54 = vpack.c.b16 %v1225_v19, %v1224_v39  ;;  %v1194_v51 = vrot.slane %v1193_v55, 4 }
  0x9e   : > { %v3186_v5 = vpop.f32.mrf.mxu1 }
  0x9f   : > { %v1199_v39 = vsel %vm2890_vm4, %v1194_v51, %v1198_v12  ;;  %v1227_v12 = vunpack.c.l.b16 %v1209_v37  ;;  %v1725_v51 = vsel %vm2890_vm4, %v1720_v25, %v1724_v31  ;;  %v1371_v37 = vrot.slane %v1369_v30, 4 }
  0xa0   : > { %v1226_v15 = vunpack.c.l.b16 %v1199_v39  ;;  %v2538_v39 = vrot.slane %v2530_v28, 9 }
  0xa1   : > { %2526 = vmatmul.msk.bf16.gmra.mxu0 %vm445_vm3, %v1233_v3  ;;  %v1362_v3 = vrot.slane %v2993_v27, 5 }
  0xa2   : > { %v1235_v16 = vpack.c.b16 %v1227_v12, %v1226_v15  ;;  %v1739_v12 = vrot.slane %v1737_v56, 4 }
  0xa3   : > { %2418 = vmatmul.msk.bf16.gmra.mxu1 %vm445_vm3, %v2680_v10  ;;  %v2529_v10 = vld [vmem:[%s2862_s7 + $0xc] sm:$0xe]  ;;  %v1364_v24 = vrot.slane %v1362_v3, 4 }
  0xa5   : > { %v1366_v47 = vsel %vm2998_vm7, %v1364_v24, %v1365_v22 }
  0xa6   : > { %v3205_v29 = vpop.f32.mrf.mxu1  ;;  %v1419_v59 = vunpack.c.l.b16 %v1366_v47  ;;  %v1906_v47 = vunpack.c.l.b16 %v1725_v51 }
  0xa8   : > { %v3210_v41 = vpop.f32.mrf.mxu2 }
  0xa9   : > { %2435 = vmatmul.msk.bf16.gmra.mxu2 %vm445_vm3, %v746_v23  ;;  %v2537_v23 = vrot.slane %v2529_v10, 9  ;;  %v3270_v10 = vld [vmem:[%s2862_s7 + $0x28] sm:$0xf] }
  0xaa   : > { %v1746_v2 = vshll.u32 %v3270_v10, 16  ;;  %v1750_v31 = vshrl.u32 %v3270_v10, 16 }
  0xab   : > { %v1363_v32 = vsel %vm2998_vm7, %v2537_v23, %v1362_v3  ;;  %v2646_v3 = vld [vmem:[%s2862_s7 + $0x18] sm:$0xe]  ;;  %v2058_v23 = vrot.slane %v2056_v6, 4 }
  0xac   : > { %v3218_v52 = vpop.f32.mrf.mxu0  ;;  %v3220_v53 = vpop.f32.mrf.mxu3  ;;  %v1418_v55 = vunpack.c.l.b16 %v1363_v32  ;;  %v2654_v26 = vrot.slane %v2646_v3, 9  ;;  %v2690_v32 = vld [vmem:[%s2862_s7 + $0x18] sm:$0xff] }
  0xad   : > { %2494 = vmatmul.msk.bf16.gmra.mxu3 %vm445_vm3, %v2688_v45  ;;  %v2615_v45 = vld [vmem:[%s2862_s7 + $0x20] sm:$0x1] }
  0xae   : > { %v1434_v9 = vpack.c.b16 %v1419_v59, %v1418_v55  ;;  %v2059_v24 = vrot.slane %v2615_v45, 5  ;;  %v1752_v55 = vrot.slane %v1750_v31, 4  ;;  %v3296_v59 = vld [vmem:[%s2862_s7 + $0x2c] sm:$0x1] }
  0xaf   : > { %v1756_v51 = vshll.u32 %v3296_v59, 16 }
  0xb0   : > { %v3233_v35 = vpop.f32.mrf.mxu1  ;;  %v3240_v17 = vpop.f32.mrf.mxu2 }
  0xb1   : > { %2527 = vmatmul.msk.bf16.gmra.mxu0 %vm445_vm3, %v1234_v54  ;;  %v1732_v54 = vshll.u32 %v2615_v45, 16  ;;  %v2057_v45 = vsel %vm2998_vm7, %v2654_v26, %v2056_v6 }
  0xb2   : > { %v2112_v3 = vunpack.c.l.b16 %v2057_v45 }
  0xb3   : > { %2419 = vmatmul.msk.bf16.gmra.mxu1 %vm445_vm3, %v2681_v0  ;;  %v1734_v0 = vrot.slane %v1732_v54, 5  ;;  %v1748_v54 = vrot.slane %v1746_v2, 5 }
  0xb4   : > { %v3244_v27 = vpop.f32.mrf.mxu0  ;;  %v3246_v38 = vpop.f32.mrf.mxu3 }
  0xb5   : > { %v1735_v22 = vsel %vm2890_vm4, %v1730_v60, %v1734_v0 }
  0xb6   : > { %v1907_v48 = vunpack.c.l.b16 %v1735_v22 }
  0xb8   : > { %v3253_v19 = vpop.f32.mrf.mxu1  ;;  %v1922_v0 = vpack.c.b16 %v1907_v48, %v1906_v47 }
  0xb9   : > { %2436 = vmatmul.msk.bf16.gmra.mxu2 %vm445_vm3, %v747_v40  ;;  %v1740_v40 = vshll.u32 %v2616_v46, 16 }
  0xbb   : > { %v1742_v20 = vrot.slane %v1740_v40, 5  ;;  %v3311_v40 = vld [vmem:[%s2862_s7 + $0x34] sm:$0xf] }
  0xbc   : > { %v3261_v8 = vpop.f32.mrf.mxu2 }
  0xbd   : > { %2495 = vmatmul.msk.bf16.gmra.mxu3 %vm445_vm3, %v2689_v49  ;;  %v2060_v49 = vsel %vm2998_vm7, %v2058_v23, %v2059_v24  ;;  %v1743_v46 = vor.u32 %v1742_v20, %v1739_v12  ;;  %v2647_v24 = vld [vmem:[%s2862_s7 + $0x24] sm:$0xe]  ;;  %v1376_v12 = vrot.slane %v3068_v62, 5  ;;  %v1770_v20 = vshll.u32 %v3311_v40, 16 }
  0xbe   : > { %v3266_v7 = vpop.f32.mrf.mxu0  ;;  %v2113_v6 = vunpack.c.l.b16 %v2060_v49 }
  0xbf   : > { %v1744_v31 = vrot.slane %v1743_v46, 4 }
  0xc0   : > { %v3272_v57 = vpop.f32.mrf.mxu3  ;;  %v599_v14 = vpop.f32.mrf.mxu1  ;;  %v2128_v28 = vpack.c.b16 %v2113_v6, %v2112_v3  ;;  %v2066_v3 = vrot.slane %v3296_v59, 5 }
  0xc1   : > { %2528 = vmatmul.msk.bf16.gmra.mxu0 %vm445_vm3, %v1235_v16  ;;  %v600_v61 = vadd.f32 %v599_v14, %v3218_v52  ;;  %v1372_v52 = vrot.slane %v3053_v11, 5  ;;  %v1370_v16 = vsel %vm2998_vm7, %v2538_v39, %v1369_v30  ;;  %v1753_v14 = vor.u32 %v1752_v55, %v1748_v54  ;;  %v2619_v30 = vld [vmem:[%s2862_s7 + $0x30] sm:$0xf] }
  0xc2   : > { %v1420_v26 = vunpack.c.l.b16 %v1370_v16  ;;  %v1761_v47 = vshrl.u32 %v2619_v30, 16  ;;  %v1764_v48 = vshll.u32 %v2619_v30, 16  ;;  %v1379_v55 = vrot.slane %v3086_v34, 5 }
  0xc3   : > { %2546 = vmatmul.msk.bf16.vlgmr.msra.gmra.mxu1 %vm445_vm3, %v1434_v9  ;;  %v1373_v60 = vsel %vm2998_vm7, %v1371_v37, %v1372_v52  ;;  %v1754_v39 = vrot.slane %v1753_v14, 4  ;;  %v2063_v37 = vrot.slane %v3270_v10, 5  ;;  %v2531_v10 = vld [vmem:[%s2862_s7 + $0x24] sm:$0xe] }
  0xc4   : > { %v3285_v4 = vpop.f32.mrf.mxu2  ;;  %v1421_v22 = vunpack.c.l.b16 %v1373_v60  ;;  %v1749_v60 = vsel %vm2890_vm4, %v1744_v31, %v1748_v54  ;;  %v1763_v6 = vrot.slane %v1761_v47, 4  ;;  %v1766_v46 = vrot.slane %v1764_v48, 5 }
  0xc5   : > { %v2065_v62 = vrot.slane %v2063_v37, 4  ;;  %v1772_v54 = vrot.slane %v1770_v20, 5  ;;  %v1908_v30 = vunpack.c.l.b16 %v1749_v60 }
  0xc6   : > { %v3293_v15 = vpop.f32.mrf.mxu0  ;;  %v1435_v52 = vpack.c.b16 %v1421_v22, %v1420_v26  ;;  %v1378_v26 = vrot.slane %v1376_v12, 4 }
  0xc7   : > { %v2067_v31 = vsel %vm2998_vm7, %v2065_v62, %v2066_v3  ;;  %v2648_v3 = vld [vmem:[%s2862_s7 + $0x30] sm:$0xe] }
  0xc8   : > { %v3298_v25 = vpop.f32.mrf.mxu3  ;;  %v601_v11 = vpop.f32.mrf.mxu1 }
  0xc9   : > { %2605 = vmatmul.msk.bf16.vlgmr.msra.gmra.mxu2 %vm445_vm3, %v2690_v32  ;;  %v602_v9 = vadd.f32 %v601_v11, %v3244_v27  ;;  %v1758_v27 = vrot.slane %v1756_v51, 5  ;;  %v2655_v32 = vrot.slane %v2647_v24, 9  ;;  %v2539_v51 = vrot.slane %v2531_v10, 9  ;;  %v2691_v24 = vld [vmem:[%s2862_s7 + $0x24] sm:$0xff] }
  0xcb   : > { %v2064_v34 = vsel %vm2998_vm7, %v2655_v32, %v2063_v37  ;;  %v1380_v32 = vsel %vm2998_vm7, %v1378_v26, %v1379_v55 }
  0xcc   : > { %v784_v23 = vpop.f32.mrf.mxu2 }
  0xcd   : > { %2638 = vmatmul.msk.bf16.vlgmr.msra.gmra.mxu3 %vm445_vm3, %v1922_v0  ;;  %v824_v56 = vadd.f32 %v784_v23, %v600_v61  ;;  %v1774_v61 = vshrl.u32 %v3311_v40, 16  ;;  %v1759_v0 = vsel %vm2890_vm4, %v1754_v39, %v1758_v27  ;;  %v2114_v39 = vunpack.c.l.b16 %v2064_v34 }
  0xce   : > { %v1272_v2 = vpop.f32.mrf.mxu0  ;;  %v1767_v27 = vor.u32 %v1766_v46, %v1763_v6  ;;  %v2070_v46 = vrot.slane %v3311_v40, 5 }
  0xcf   : > { %v1776_v22 = vrot.slane %v1774_v61, 4 }
  0xd0   : > { %v938_v45 = vpop.f32.mrf.mxu3  ;;  %v604_v49 = vpop.f32.mrf.mxu1 }
  0xd1   : > { %2663 = vmatmul.msk.bf16.vlgmr.msra.gmra.mxu0 %vm445_vm3, %v2128_v28  ;;  %v978_v11 = vadd.f32 %v938_v45, %v824_v56  ;;  %v605_v16 = vadd.f32 %v604_v49, %v3266_v7  ;;  %v1909_v28 = vunpack.c.l.b16 %v1759_v0  ;;  %v3333_v56 = vld [vmem:[%s2862_s7 + $0x38] sm:$0x1]  ;;  %v2115_v49 = vunpack.c.l.b16 %v2067_v31 }
  0xd2   : > { %v1780_v47 = vshll.u32 %v3333_v56, 16 }
  0xd3   : > { %2547 = vmatmul.msk.bf16.gmra.mxu1 %vm445_vm3, %v1435_v52  ;;  %v3329_v7 = vadd.f32 %v1272_v2, %v978_v11  ;;  %v1377_v52 = vsel %vm2998_vm7, %v2539_v51, %v1376_v12  ;;  %v1923_v45 = vpack.c.b16 %v1909_v28, %v1908_v30  ;;  %v1423_v11 = vunpack.c.l.b16 %v1380_v32  ;;  %v3351_v51 = vld [vmem:[%s2862_s7 + $0x40] sm:$0xf] }
  0xd4   : > { %v786_v14 = vpop.f32.mrf.mxu2  ;;  %v1422_v61 = vunpack.c.l.b16 %v1377_v52  ;;  %v1768_v12 = vrot.slane %v1767_v27, 4  ;;  %v1782_v0 = vrot.slane %v1780_v47, 5  ;;  %v2129_v55 = vpack.c.b16 %v2115_v49, %v2114_v39  ;;  %v2692_v49 = vld [vmem:[%s2862_s7 + $0x30] sm:$0xff] }
  0xd5   : > { %v825_v23 = vadd.f32 %v786_v14, %v602_v9  ;;  %v1777_v9 = vor.u32 %v1776_v22, %v1772_v54  ;;  %v2622_v14 = vld [vmem:[%s2862_s7 + $0x3c] sm:$0xf]  ;;  %v1383_v30 = vrot.slane %v3094_v44, 5  ;;  %v2072_v27 = vrot.slane %v2070_v46, 4 }
  0xd6   : > { %v1274_v59 = vpop.f32.mrf.mxu0  ;;  %v1785_v31 = vshrl.u32 %v2622_v14, 16  ;;  %v1788_v39 = vshll.u32 %v2622_v14, 16  ;;  %v1386_v52 = vrot.slane %v3106_v63, 5 }
  0xd7   : > { %v1778_v60 = vrot.slane %v1777_v9, 4 }
  0xd8   : > { %v940_v37 = vpop.f32.mrf.mxu3  ;;  %v606_v2 = vpop.f32.mrf.mxu1 }
  0xd9   : > { %v979_v48 = vadd.f32 %v940_v37, %v825_v23  ;;  %2606 = vmatmul.msk.bf16.gmra.mxu2 %vm445_vm3, %v2691_v24  ;;  %v607_v20 = vadd.f32 %v606_v2, %v3293_v15  ;;  %v1436_v15 = vpack.c.b16 %v1423_v11, %v1422_v61  ;;  %v1773_v23 = vsel %vm2890_vm4, %v1768_v12, %v1772_v54 }
  0xda   : > { %v1783_v24 = vsel %vm2890_vm4, %v1778_v60, %v1782_v0  ;;  %v2073_v37 = vrot.slane %v3333_v56, 5  ;;  %v1794_v54 = vshll.u32 %v3351_v51, 16  ;;  %v1798_v2 = vshrl.u32 %v3351_v51, 16  ;;  %v2624_v0 = vld [vmem:[%s2862_s7 + $0x44] sm:$0x1] }
  0xdb   : > { %v3346_v34 = vadd.f32 %v1274_v59, %v979_v48  ;;  %v2532_v59 = vld [vmem:[%s2862_s7 + $0x30] sm:$0xe]  ;;  %v1911_v9 = vunpack.c.l.b16 %v1783_v24  ;;  %v1385_v48 = vrot.slane %v1383_v30, 4  ;;  %v1787_v61 = vrot.slane %v1785_v31, 4  ;;  %v2649_v31 = vld [vmem:[%s2862_s7 + $0x3c] sm:$0xe] }
  0xdc   : > { %v789_v10 = vpop.f32.mrf.mxu2  ;;  %v2540_v47 = vrot.slane %v2532_v59, 9  ;;  %v1790_v11 = vrot.slane %v1788_v39, 5  ;;  %v2074_v63 = vsel %vm2998_vm7, %v2072_v27, %v2073_v37  ;;  %v1796_v12 = vrot.slane %v1794_v54, 5 }
  0xdd   : > { %2639 = vmatmul.msk.bf16.gmra.mxu3 %vm445_vm3, %v1923_v45  ;;  %v826_v62 = vadd.f32 %v789_v10, %v605_v16  ;;  %v2656_v16 = vrot.slane %v2648_v3, 9  ;;  %v1800_v60 = vrot.slane %v1798_v2, 4  ;;  %v1804_v24 = vshll.u32 %v2624_v0, 16  ;;  %v3385_v2 = vld [vmem:[%s2862_s7 + $0x4c] sm:$0xf] }
  0xde   : > { %v1277_v6 = vpop.f32.mrf.mxu0 }
  0xdf   : > { %v2071_v56 = vsel %vm2998_vm7, %v2656_v16, %v2070_v46  ;;  %v1387_v46 = vsel %vm2998_vm7, %v1385_v48, %v1386_v52  ;;  %v2077_v16 = vrot.slane %v3351_v51, 5  ;;  %v2080_v48 = vrot.slane %v2624_v0, 5 }
  0xe0   : > { %v943_v26 = vpop.f32.mrf.mxu3  ;;  %v609_v22 = vpop.f32.mrf.mxu1  ;;  %v2116_v3 = vunpack.c.l.b16 %v2071_v56  ;;  %v1425_v59 = vunpack.c.l.b16 %v1387_v46 }
  0xe1   : > { %2664 = vmatmul.msk.bf16.gmra.mxu0 %vm445_vm3, %v2129_v55  ;;  %v980_v28 = vadd.f32 %v943_v26, %v826_v62  ;;  %v610_v40 = vadd.f32 %v609_v22, %v3186_v5  ;;  %v1910_v5 = vunpack.c.l.b16 %v1773_v23  ;;  %v1791_v22 = vor.u32 %v1790_v11, %v1787_v61 }
  0xe2   : > { %v1801_v23 = vor.u32 %v1800_v60, %v1796_v12  ;;  %v2079_v51 = vrot.slane %v2077_v16, 4  ;;  %v1390_v11 = vrot.slane %v3114_v13, 5 }
  0xe3   : > { %2548 = vmatmul.msk.bf16.gmra.mxu1 %vm445_vm3, %v1436_v15  ;;  %v3366_v44 = vadd.f32 %v1277_v6, %v980_v28  ;;  %v1924_v62 = vpack.c.b16 %v1911_v9, %v1910_v5  ;;  %v2117_v15 = vunpack.c.l.b16 %v2074_v63  ;;  %v1792_v54 = vrot.slane %v1791_v22, 4 }
  0xe4   : > { %v791_v32 = vpop.f32.mrf.mxu2  ;;  %v1806_v5 = vrot.slane %v1804_v24, 5  ;;  %v2657_v9 = vrot.slane %v2649_v31, 9  ;;  %v1822_v63 = vshrl.u32 %v3385_v2, 16  ;;  %v2693_v24 = vld [vmem:[%s2862_s7 + $0x3c] sm:$0xff]  ;;  %v3411_v31 = vld [vmem:[%s2862_s7 + $0x50] sm:$0x1] }
  0xe5   : > { %v827_v45 = vadd.f32 %v791_v32, %v607_v20  ;;  %v1384_v20 = vsel %vm2998_vm7, %v2540_v47, %v1383_v30  ;;  %v2625_v30 = vld [vmem:[%s2862_s7 + $0x48] sm:$0xf]  ;;  %v2130_v27 = vpack.c.b16 %v2117_v15, %v2116_v3  ;;  %v1802_v32 = vrot.slane %v1801_v23, 4 }
  0xe6   : > { %v1279_v10 = vpop.f32.mrf.mxu0  ;;  %v1424_v28 = vunpack.c.l.b16 %v1384_v20  ;;  %v1797_v0 = vsel %vm2890_vm4, %v1792_v54, %v1796_v12  ;;  %v2078_v13 = vsel %vm2998_vm7, %v2657_v9, %v2077_v16  ;;  %v1392_v15 = vrot.slane %v1390_v11, 4 }
  0xe7   : > { %v1807_v3 = vsel %vm2890_vm4, %v1802_v32, %v1806_v5  ;;  %v1824_v22 = vrot.slane %v1822_v63, 4 }
  0xe8   : > { %v945_v55 = vpop.f32.mrf.mxu3  ;;  %v611_v6 = vpop.f32.mrf.mxu1  ;;  %v1437_v47 = vpack.c.b16 %v1425_v59, %v1424_v28  ;;  %v1912_v28 = vunpack.c.l.b16 %v1797_v0  ;;  %v1913_v16 = vunpack.c.l.b16 %v1807_v3  ;;  %v2084_v0 = vrot.slane %v3385_v2, 5 }
  0xe9   : > { %v981_v14 = vadd.f32 %v945_v55, %v827_v45  ;;  %2607 = vmatmul.msk.bf16.gmra.mxu2 %vm445_vm3, %v2692_v49  ;;  %v612_v26 = vadd.f32 %v611_v6, %v3205_v29  ;;  %v1809_v45 = vshrl.u32 %v2625_v30, 16  ;;  %v1812_v49 = vshll.u32 %v2625_v30, 16  ;;  %v2533_v55 = vld [vmem:[%s2862_s7 + $0x3c] sm:$0xe] }
  0xea   : > { %v2081_v6 = vsel %vm2998_vm7, %v2079_v51, %v2080_v48  ;;  %v1925_v9 = vpack.c.b16 %v1913_v16, %v1912_v28  ;;  %v2086_v28 = vrot.slane %v2084_v0, 4  ;;  %v2087_v16 = vrot.slane %v3411_v31, 5 }
  0xeb   : > { %v3387_v52 = vadd.f32 %v1279_v10, %v981_v14  ;;  %v1814_v20 = vrot.slane %v1812_v49, 5  ;;  %v2541_v14 = vrot.slane %v2533_v55, 9  ;;  %v2119_v30 = vunpack.c.l.b16 %v2081_v6  ;;  %v2628_v49 = vld [vmem:[%s2862_s7 + $0x54] sm:$0xf] }
  0xec   : > { %v794_v39 = vpop.f32.mrf.mxu2  ;;  %v1836_v6 = vshll.u32 %v2628_v49, 16 }
  0xed   : > { %2640 = vmatmul.msk.bf16.gmra.mxu3 %vm445_vm3, %v1924_v62  ;;  %v828_v37 = vadd.f32 %v794_v39, %v610_v40  ;;  %v1818_v40 = vshll.u32 %v3385_v2, 16  ;;  %v1393_v62 = vrot.slane %v3129_v43, 5  ;;  %v2118_v39 = vunpack.c.l.b16 %v2078_v13 }
  0xee   : > { %v1282_v29 = vpop.f32.mrf.mxu0  ;;  %v1391_v54 = vsel %vm2998_vm7, %v2541_v14, %v1390_v11  ;;  %v1833_v13 = vshrl.u32 %v2628_v49, 16  ;;  %v1397_v2 = vrot.slane %v3142_v58, 5  ;;  %v1400_v58 = vrot.slane %v3156_v18, 5 }
  0xef   : > { %v3407_v12 = vrot.slane %v1818_v40, 5  ;;  %v1426_v48 = vunpack.c.l.b16 %v1391_v54  ;;  %v2088_v49 = vsel %vm2998_vm7, %v2086_v28, %v2087_v16  ;;  %v2631_v28 = vld [vmem:[%s2862_s7 + $0x60] sm:$0xf] }
  0xf0   : > { %v948_v56 = vpop.f32.mrf.mxu3  ;;  %v614_v61 = vpop.f32.mrf.mxu1 }
  0xf1   : > { %2665 = vmatmul.msk.bf16.gmra.mxu0 %vm445_vm3, %v2130_v27  ;;  %v982_v10 = vadd.f32 %v948_v56, %v828_v37  ;;  %v615_v60 = vadd.f32 %v614_v61, %v3233_v35  ;;  %v1811_v35 = vrot.slane %v1809_v45, 4  ;;  %v3423_v56 = vld [vmem:[%s2862_s7 + $0x58] sm:$0xf]  ;;  %v2131_v61 = vpack.c.b16 %v2119_v30, %v2118_v39 }
  0xf2   : > { %v1835_v39 = vrot.slane %v1833_v13, 4  ;;  %v1838_v30 = vrot.slane %v1836_v6, 5 }
  0xf3   : > { %2549 = vmatmul.msk.bf16.gmra.mxu1 %vm445_vm3, %v1437_v47  ;;  %v3405_v46 = vadd.f32 %v1282_v29, %v982_v10  ;;  %v1394_v29 = vsel %vm2998_vm7, %v1392_v15, %v1393_v62  ;;  %v1815_v32 = vor.u32 %v1814_v20, %v1811_v35  ;;  %v1828_v47 = vshll.u32 %v3411_v31, 16  ;;  %v2650_v62 = vld [vmem:[%s2862_s7 + $0x48] sm:$0xe] }
  0xf4   : > { %v796_v43 = vpop.f32.mrf.mxu2  ;;  %v1427_v45 = vunpack.c.l.b16 %v1394_v29  ;;  %v1842_v35 = vshll.u32 %v3423_v56, 16  ;;  %v1846_v20 = vshrl.u32 %v3423_v56, 16 }
  0xf5   : > { %v829_v23 = vadd.f32 %v796_v43, %v612_v26  ;;  %v1825_v26 = vor.u32 %v1824_v22, %v3407_v12  ;;  %v1816_v40 = vrot.slane %v1815_v32, 4  ;;  %v1830_v55 = vrot.slane %v1828_v47, 5 }
  0xf6   : > { %v1284_v59 = vpop.f32.mrf.mxu0  ;;  %v1438_v43 = vpack.c.b16 %v1427_v45, %v1426_v48  ;;  %v2658_v22 = vrot.slane %v2650_v62, 9  ;;  %v1399_v32 = vrot.slane %v1397_v2, 4 }
  0xf7   : > { %v1826_v63 = vrot.slane %v1825_v26, 4  ;;  %v3446_v26 = vld [vmem:[%s2862_s7 + $0x5c] sm:$0x1] }
  0xf8   : > { %v950_v27 = vpop.f32.mrf.mxu3  ;;  %v616_v37 = vpop.f32.mrf.mxu1  ;;  %v2085_v45 = vsel %vm2998_vm7, %v2658_v22, %v2084_v0  ;;  %v1852_v18 = vshll.u32 %v3446_v26, 16  ;;  %v2651_v22 = vld [vmem:[%s2862_s7 + $0x54] sm:$0xe] }
  0xf9   : > { %v983_v5 = vadd.f32 %v950_v27, %v829_v23  ;;  %2608 = vmatmul.msk.bf16.gmra.mxu2 %vm445_vm3, %v2693_v24  ;;  %v617_v51 = vadd.f32 %v616_v37, %v3253_v19  ;;  %v1831_v24 = vsel %vm2890_vm4, %v1826_v63, %v1830_v55  ;;  %v1844_v27 = vrot.slane %v1842_v35, 5 }
  0xfa   : > { %v1848_v37 = vrot.slane %v1846_v20, 4  ;;  %v1915_v31 = vunpack.c.l.b16 %v1831_v24  ;;  %v2120_v0 = vunpack.c.l.b16 %v2085_v45  ;;  %v1407_v45 = vrot.slane %v3183_v1, 5 }
  0xfb   : > { %v3428_v3 = vadd.f32 %v1284_v59, %v983_v5  ;;  %v2534_v59 = vld [vmem:[%s2862_s7 + $0x48] sm:$0xe] }
  0xfc   : > { %v799_v11 = vpop.f32.mrf.mxu2  ;;  %v2542_v29 = vrot.slane %v2534_v59, 9 }
  0xfd   : > { %2641 = vmatmul.msk.bf16.gmra.mxu3 %vm445_vm3, %v1925_v9  ;;  %v830_v10 = vadd.f32 %v799_v11, %v615_v60  ;;  %v1821_v60 = vsel %vm2890_vm4, %v1816_v40, %v3407_v12  ;;  %v2694_v9 = vld [vmem:[%s2862_s7 + $0x48] sm:$0xff]  ;;  %v1849_v11 = vor.u32 %v1848_v37, %v1844_v27  ;;  %v2659_v37 = vrot.slane %v2651_v22, 9 }
  0xfe   : > { %v1287_v19 = vpop.f32.mrf.mxu0  ;;  %v1914_v47 = vunpack.c.l.b16 %v1821_v60 }
  0xff   : > { %v1850_v6 = vrot.slane %v1849_v11, 4 }
 0x100   : > { %v953_v14 = vpop.f32.mrf.mxu3  ;;  %v619_v15 = vpop.f32.mrf.mxu1  ;;  %v1926_v62 = vpack.c.b16 %v1915_v31, %v1914_v47  ;;  %v2094_v47 = vrot.slane %v3446_v26, 5  ;;  %v2535_v31 = vld [vmem:[%s2862_s7 + $0x54] sm:$0xe] }
 0x101   : > { %2666 = vmatmul.msk.bf16.gmra.mxu0 %vm445_vm3, %v2131_v61  ;;  %v984_v23 = vadd.f32 %v953_v14, %v830_v10  ;;  %v1839_v61 = vor.u32 %v1838_v30, %v1835_v39  ;;  %v1401_v10 = vsel %vm2998_vm7, %v1399_v32, %v1400_v58  ;;  %v620_v35 = vadd.f32 %v619_v15, %v3210_v41  ;;  %v3467_v39 = vld [vmem:[%s2862_s7 + $0x64] sm:$0xf] }
 0x102   : > { %v1854_v14 = vrot.slane %v1852_v18, 5  ;;  %v1857_v32 = vshrl.u32 %v2631_v28, 16 }
 0x103   : > { %2550 = vmatmul.msk.bf16.gmra.mxu1 %vm445_vm3, %v1438_v43  ;;  %v3442_v12 = vadd.f32 %v1287_v19, %v984_v23  ;;  %v2121_v19 = vunpack.c.l.b16 %v2088_v49  ;;  %v1840_v13 = vrot.slane %v1839_v61, 4  ;;  %v1429_v43 = vunpack.c.l.b16 %v1401_v10 }
 0x104   : > { %v801_v54 = vpop.f32.mrf.mxu2  ;;  %v1855_v15 = vsel %vm2890_vm4, %v1850_v6, %v1854_v14  ;;  %v1859_v10 = vrot.slane %v1857_v32, 4 }
 0x105   : > { %v831_v5 = vadd.f32 %v801_v54, %v617_v51  ;;  %v1398_v51 = vsel %vm2998_vm7, %v2542_v29, %v1397_v2  ;;  %v2091_v2 = vrot.slane %v3423_v56, 5  ;;  %v2132_v23 = vpack.c.b16 %v2121_v19, %v2120_v0  ;;  %v2695_v0 = vld [vmem:[%s2862_s7 + $0x54] sm:$0xff] }
 0x106   : > { %v1289_v48 = vpop.f32.mrf.mxu0  ;;  %v1428_v20 = vunpack.c.l.b16 %v1398_v51  ;;  %v1845_v41 = vsel %vm2890_vm4, %v1840_v13, %v1844_v27  ;;  %v1404_v29 = vrot.slane %v3168_v42, 5  ;;  %v1866_v27 = vshll.u32 %v3467_v39, 16  ;;  %v2633_v13 = vld [vmem:[%s2862_s7 + $0x68] sm:$0x1] }
 0x107   : > { %v2093_v54 = vrot.slane %v2091_v2, 4  ;;  %v1916_v49 = vunpack.c.l.b16 %v1845_v41  ;;  %v1917_v42 = vunpack.c.l.b16 %v1855_v15  ;;  %v2092_v11 = vsel %vm2998_vm7, %v2659_v37, %v2091_v2 }
 0x108   : > { %v955_v40 = vpop.f32.mrf.mxu3  ;;  %v621_v63 = vpop.f32.mrf.mxu1  ;;  %v1439_v30 = vpack.c.b16 %v1429_v43, %v1428_v20  ;;  %v1406_v51 = vrot.slane %v1404_v29, 4  ;;  %v2122_v6 = vunpack.c.l.b16 %v2092_v11 }
 0x109   : > { %v985_v55 = vadd.f32 %v955_v40, %v831_v5  ;;  %2609 = vmatmul.msk.bf16.gmra.mxu2 %vm445_vm3, %v2694_v9  ;;  %v1860_v5 = vshll.u32 %v2631_v28, 16  ;;  %v622_v61 = vadd.f32 %v621_v63, %v3240_v17  ;;  %v2543_v40 = vrot.slane %v2535_v31, 9 }
 0x10a   : > { %v2095_v1 = vsel %vm2998_vm7, %v2093_v54, %v2094_v47  ;;  %v1868_v17 = vrot.slane %v1866_v27, 5  ;;  %v1876_v28 = vshll.u32 %v2633_v13, 16  ;;  %v2098_v31 = vrot.slane %v3467_v39, 5  ;;  %v2634_v27 = vld [vmem:[%s2862_s7 + $0x6c] sm:$0xf] }
 0x10b   : > { %v3464_v16 = vadd.f32 %v1289_v48, %v985_v55  ;;  %v1870_v48 = vshrl.u32 %v3467_v39, 16  ;;  %v1862_v55 = vrot.slane %v1860_v5, 5  ;;  %v2123_v20 = vunpack.c.l.b16 %v2095_v1  ;;  %v2652_v5 = vld [vmem:[%s2862_s7 + $0x60] sm:$0xe] }
 0x10c   : > { %v804_v60 = vpop.f32.mrf.mxu2  ;;  %v1405_v14 = vsel %vm2998_vm7, %v2543_v40, %v1404_v29  ;;  %v1878_v32 = vrot.slane %v1876_v28, 5  ;;  %v2536_v40 = vld [vmem:[%s2862_s7 + $0x60] sm:$0xe]  ;;  %v1881_v39 = vshrl.u32 %v2634_v27, 16  ;;  %v1414_v1 = vrot.slane %v3216_v50, 5 }
 0x10d   : > { %2642 = vmatmul.msk.bf16.gmra.mxu3 %vm445_vm3, %v1926_v62  ;;  %v832_v24 = vadd.f32 %v804_v60, %v620_v35  ;;  %v1872_v63 = vrot.slane %v1870_v48, 4  ;;  %v1408_v60 = vsel %vm2998_vm7, %v1406_v51, %v1407_v45  ;;  %v1863_v22 = vor.u32 %v1862_v55, %v1859_v10 }
 0x10e   : > { %v1292_v59 = vpop.f32.mrf.mxu0  ;;  %v1431_v41 = vunpack.c.l.b16 %v1408_v60  ;;  %v2133_v15 = vpack.c.b16 %v2123_v20, %v2122_v6  ;;  %v1884_v51 = vshll.u32 %v2634_v27, 16  ;;  %v2100_v10 = vrot.slane %v2098_v31, 4 }
 0x10f   : > { %v2101_v55 = vrot.slane %v2633_v13, 5  ;;  %v2696_v13 = vld [vmem:[%s2862_s7 + $0x60] sm:$0xff] }
 0x110   : > { %v958_v56 = vpop.f32.mrf.mxu3  ;;  %v624_v58 = vpop.f32.mrf.mxu1 }
 0x111   : > { %2667 = vmatmul.msk.bf16.gmra.mxu0 %vm445_vm3, %v2132_v23  ;;  %v986_v9 = vadd.f32 %v958_v56, %v832_v24  ;;  %v1927_v23 = vpack.c.b16 %v1917_v42, %v1916_v49  ;;  %v1873_v24 = vor.u32 %v1872_v63, %v1868_v17  ;;  %v1864_v56 = vrot.slane %v1863_v22, 4 }
 0x112   : > { %v1411_v42 = vrot.slane %v3197_v21, 5  ;;  %v1883_v22 = vrot.slane %v1881_v39, 4 }
 0x113   : > { %2551 = vmatmul.msk.bf16.gmra.mxu1 %vm445_vm3, %v1439_v30  ;;  %v3484_v18 = vadd.f32 %v1292_v59, %v986_v9  ;;  %v625_v59 = vadd.f32 %v624_v58, %v3261_v8  ;;  %v1430_v30 = vunpack.c.l.b16 %v1405_v14  ;;  %v1874_v29 = vrot.slane %v1873_v24, 4  ;;  %v3503_v58 = vld [vmem:[%s2862_s7 + $0x70] sm:$0xf]  ;;  %v2636_v24 = vld [vmem:[%s2862_s7 + $0x74] sm:$0x1] }
 0x114   : > { %v806_v26 = vpop.f32.mrf.mxu2  ;;  %v1869_v49 = vsel %vm2890_vm4, %v1864_v56, %v1868_v17  ;;  %v1413_v20 = vrot.slane %v1411_v42, 4  ;;  %v2105_v39 = vrot.slane %v3503_v58, 5 }
 0x115   : > { %v833_v62 = vadd.f32 %v806_v26, %v622_v61  ;;  %v1440_v8 = vpack.c.b16 %v1431_v41, %v1430_v30  ;;  %v2660_v61 = vrot.slane %v2652_v5, 9  ;;  %v1879_v26 = vsel %vm2890_vm4, %v1874_v29, %v1878_v32 }
 0x116   : > { %v1294_v19 = vpop.f32.mrf.mxu0  ;;  %v1919_v6 = vunpack.c.l.b16 %v1879_v26  ;;  %v1900_v5 = vshll.u32 %v2636_v24, 16 }
 0x117   : > { %v2099_v60 = vsel %vm2998_vm7, %v2660_v61, %v2098_v31 }
 0x118   : > { %v960_v35 = vpop.f32.mrf.mxu3  ;;  %v626_v43 = vpop.f32.mrf.mxu1 }
 0x119   : > { %v987_v2 = vadd.f32 %v960_v35, %v833_v62  ;;  %2610 = vmatmul.msk.bf16.gmra.mxu2 %vm445_vm3, %v2695_v0  ;;  %v1890_v62 = vshll.u32 %v3503_v58, 16  ;;  %v1894_v0 = vshrl.u32 %v3503_v58, 16  ;;  %v627_v21 = vadd.f32 %v626_v43, %v3285_v4 }
 0x11a   : > { %v2544_v35 = vrot.slane %v2536_v40, 9  ;;  %v2102_v4 = vsel %vm2998_vm7, %v2100_v10, %v2101_v55  ;;  %v1902_v40 = vrot.slane %v1900_v5, 5  ;;  %v2653_v10 = vld [vmem:[%s2862_s7 + $0x6c] sm:$0xe] }
 0x11b   : > { %v3498_v9 = vadd.f32 %v1294_v19, %v987_v2  ;;  %v1918_v19 = vunpack.c.l.b16 %v1869_v49  ;;  %v1886_v2 = vrot.slane %v1884_v51, 5  ;;  %v1892_v43 = vrot.slane %v1890_v62, 5 }
 0x11c   : > { %v809_v37 = vpop.f32.mrf.mxu2  ;;  %v1412_v41 = vsel %vm2998_vm7, %v2544_v35, %v1411_v42 }
 0x11d   : > { %2643 = vmatmul.msk.bf16.gmra.mxu3 %vm445_vm3, %v1927_v23  ;;  %v834_v54 = vadd.f32 %v809_v37, %v625_v59  ;;  %v1896_v23 = vrot.slane %v1894_v0, 4  ;;  %v2124_v59 = vunpack.c.l.b16 %v2099_v60  ;;  %v1928_v56 = vpack.c.b16 %v1919_v6, %v1918_v19 }
 0x11e   : > { %v1297_v47 = vpop.f32.mrf.mxu0  ;;  %v1887_v29 = vor.u32 %v1886_v2, %v1883_v22  ;;  %v1432_v31 = vunpack.c.l.b16 %v1412_v41 }
 0x11f   : > { %v1897_v32 = vor.u32 %v1896_v23, %v1892_v43 }
 0x120   : > { %v963_v48 = vpop.f32.mrf.mxu3  ;;  %v629_v45 = vpop.f32.mrf.mxu1  ;;  %v1888_v42 = vrot.slane %v1887_v29, 4 }
 0x121   : > { %2668 = vmatmul.msk.bf16.gmra.mxu0 %vm445_vm3, %v2133_v15  ;;  %v988_v11 = vadd.f32 %v963_v48, %v834_v54  ;;  %v1415_v15 = vsel %vm2998_vm7, %v1413_v20, %v1414_v1  ;;  %v2125_v54 = vunpack.c.l.b16 %v2102_v4  ;;  %v1898_v26 = vrot.slane %v1897_v32, 4  ;;  %v2697_v20 = vld [vmem:[%s2862_s7 + $0x6c] sm:$0xff] }
 0x122   : > { %v1433_v27 = vunpack.c.l.b16 %v1415_v15  ;;  %v1893_v62 = vsel %vm2890_vm4, %v1888_v42, %v1892_v43  ;;  %v2661_v1 = vrot.slane %v2653_v10, 9 }
 0x123   : > { %2552 = vmatmul.msk.bf16.gmra.mxu1 %vm445_vm3, %v1440_v8  ;;  %v3517_v17 = vadd.f32 %v1297_v47, %v988_v11  ;;  %v630_v47 = vadd.f32 %v629_v45, %v3220_v53  ;;  %v2134_v49 = vpack.c.b16 %v2125_v54, %v2124_v59  ;;  %v1903_v0 = vsel %vm2890_vm4, %v1898_v26, %v1902_v40 }
 0x124   : > { %v811_v63 = vpop.f32.mrf.mxu2  ;;  %v1441_v51 = vpack.c.b16 %v1433_v27, %v1432_v31  ;;  %v2106_v22 = vsel %vm2998_vm7, %v2661_v1, %v2105_v39 }
 0x125   : > { %v835_v14 = vadd.f32 %v811_v63, %v627_v21  ;;  %v2107_v21 = vrot.slane %v2105_v39, 4  ;;  %v2108_v63 = vrot.slane %v2636_v24, 5  ;;  %v2126_v43 = vunpack.c.l.b16 %v2106_v22  ;;  %v3567_v39 = vld [vmem:[%s3654_s2] ss:$0 sm:$0xff] }
 0x126   : > { %v1299_v50 = vpop.f32.mrf.mxu0 }
 0x127   : > { %v2109_v36 = vsel %vm2998_vm7, %v2107_v21, %v2108_v63 }
 0x128   : > { %v965_v28 = vpop.f32.mrf.mxu3  ;;  %v631_v30 = vpop.f32.mrf.mxu1  ;;  %v2127_v23 = vunpack.c.l.b16 %v2109_v36 }
 0x129   : > { %v989_v37 = vadd.f32 %v965_v28, %v835_v14  ;;  %2611 = vmatmul.msk.bf16.gmra.mxu2 %vm445_vm3, %v2696_v13  ;;  %v632_v19 = vadd.f32 %v631_v30, %v3246_v38  ;;  %v1920_v14 = vunpack.c.l.b16 %v1893_v62  ;;  %v1921_v13 = vunpack.c.l.b16 %v1903_v0 }
 0x12a   : > { %v2135_v30 = vpack.c.b16 %v2127_v23, %v2126_v43 }
 0x12b   : > { %v3531_v8 = vadd.f32 %v1299_v50, %v989_v37  ;;  %v1929_v38 = vpack.c.b16 %v1921_v13, %v1920_v14 }
 0x12c   : > { %v814_v48 = vpop.f32.mrf.mxu2 }
 0x12d   : > { %2644 = vmatmul.msk.bf16.gmra.mxu3 %vm445_vm3, %v1928_v56  ;;  %v836_v61 = vadd.f32 %v814_v48, %v630_v47 }
 0x12e   : > { %v1302_v11 = vpop.f32.mrf.mxu0 }
 0x130   : > { %v968_v55 = vpop.f32.mrf.mxu3  ;;  %v634_v53 = vpop.f32.mrf.mxu1 }
 0x131   : > { %2669 = vmatmul.msk.bf16.gmra.mxu0 %vm445_vm3, %v2134_v49  ;;  %v990_v45 = vadd.f32 %v968_v55, %v836_v61  ;;  %v635_v24 = vadd.f32 %v634_v53, %v3272_v57 }
 0x133   : > { %2553 = vmatmul.msk.bf16.gmra.mxu1 %vm445_vm3, %v1441_v51  ;;  %v3543_v58 = vadd.f32 %v1302_v11, %v990_v45 }
 0x134   : > { %v816_v6 = vpop.f32.mrf.mxu2 }
 0x135   : > { %v837_v35 = vadd.f32 %v816_v6, %v632_v19 }
 0x136   : > { %v1304_v60 = vpop.f32.mrf.mxu0 }
 0x138   : > { %v970_v2 = vpop.f32.mrf.mxu3  ;;  %v636_v50 = vpop.f32.mrf.mxu1 }
 0x139   : > { %v991_v4 = vadd.f32 %v970_v2, %v837_v35  ;;  %2612 = vmatmul.msk.bf16.gmra.mxu2 %vm445_vm3, %v2697_v20  ;;  %v637_v54 = vadd.f32 %v636_v50, %v3298_v25 }
 0x13b   : > { %v3552_v28 = vadd.f32 %v1304_v60, %v991_v4 }
 0x13c   : > { %v819_v59 = vpop.f32.mrf.mxu2 }
 0x13d   : > { %2645 = vmatmul.msk.bf16.gmra.mxu3 %vm445_vm3, %v1929_v38  ;;  %v838_v41 = vadd.f32 %v819_v59, %v635_v24 }
 0x13e   : > { %v1307_v33 = vpop.f32.mrf.mxu0 }
 0x140   : > { %v973_v15 = vpop.f32.mrf.mxu3  ;;  %v1478_v37 = vpop.f32.mrf.mxu1 }
 0x141   : > { %2670 = vmatmul.msk.bf16.gmra.mxu0 %vm445_vm3, %v2135_v30  ;;  %v992_v56 = vadd.f32 %v973_v15, %v838_v41  ;;  %v1518_v48 = vadd.f32 %v1478_v37, %v3329_v7 }
 0x143   : > { %v3558_v29 = vadd.f32 %v1307_v33, %v992_v56 }
 0x144   : > { %v821_v57 = vpop.f32.mrf.mxu2 }
 0x145   : > { %v839_v32 = vadd.f32 %v821_v57, %v637_v54 }
 0x146   : > { %v1309_v5 = vpop.f32.mrf.mxu0 }
 0x148   : > { %v975_v47 = vpop.f32.mrf.mxu3  ;;  %v1480_v31 = vpop.f32.mrf.mxu1 }
 0x149   : > { %v993_v27 = vadd.f32 %v975_v47, %v839_v32  ;;  %v1519_v10 = vadd.f32 %v1480_v31, %v3346_v34 }
 0x14b   : > { %v3562_v49 = vadd.f32 %v1309_v5, %v993_v27 }
 0x14c   : > { %v1632_v61 = vpop.f32.mrf.mxu2 }
 0x14d   : > { %v1672_v42 = vadd.f32 %v1632_v61, %v1518_v48 }
 0x14e   : > { %v2172_v11 = vpop.f32.mrf.mxu0 }
 0x150   : > { %v1966_v25 = vpop.f32.mrf.mxu3  ;;  %v1483_v26 = vpop.f32.mrf.mxu1 }
 0x151   : > { %v2006_v40 = vadd.f32 %v1966_v25, %v1672_v42  ;;  %v1520_v34 = vadd.f32 %v1483_v26, %v3366_v44 }
 0x153   : > { %v2212_v51 = vadd.f32 %v2172_v11, %v2006_v40 }
 0x154   : > { %v1634_v7 = vpop.f32.mrf.mxu2 }
 0x155   : > { %v2232_v55 = vadd.f32 %v3567_v39, %v2212_v51  ;;  %v1673_v53 = vadd.f32 %v1634_v7, %v1519_v10 }
 0x156   : > { %v2174_v45 = vpop.f32.mrf.mxu0 }
 0x157   : > { %2249 = vst.msk [vmem:[%s3573_s29] sm:$0xff] %vm2248_vm8, %v2232_v55 }
 0x158   : > { %v1968_v62 = vpop.f32.mrf.mxu3  ;;  %v1485_v0 = vpop.f32.mrf.mxu1 }
 0x159   : > { %v2007_v1 = vadd.f32 %v1968_v62, %v1673_v53  ;;  %v1521_v22 = vadd.f32 %v1485_v0, %v3387_v52 }
 0x15b   : > { %v2213_v21 = vadd.f32 %v2174_v45, %v2007_v1 }
 0x15c   : > { %v1637_v63 = vpop.f32.mrf.mxu2 }
 0x15d   : > { %v2233_v19 = vadd.f32 %v3567_v39, %v2213_v21  ;;  %v1674_v6 = vadd.f32 %v1637_v63, %v1520_v34 }
 0x15e   : > { %v2177_v35 = vpop.f32.mrf.mxu0 }
 0x15f   : > { %2250 = vst.msk [vmem:[%s3573_s29 + $0x8] sm:$0xff] %vm2248_vm8, %v2233_v19 }
 0x160   : > { %v1971_v20 = vpop.f32.mrf.mxu3  ;;  %v1488_v14 = vpop.f32.mrf.mxu1 }
 0x161   : > { %v2008_v13 = vadd.f32 %v1971_v20, %v1674_v6  ;;  %v1522_v24 = vadd.f32 %v1488_v14, %v3405_v46 }
 0x163   : > { %v2214_v60 = vadd.f32 %v2177_v35, %v2008_v13 }
 0x164   : > { %v1639_v36 = vpop.f32.mrf.mxu2 }
 0x165   : > { %v2234_v2 = vadd.f32 %v3567_v39, %v2214_v60  ;;  %v1675_v50 = vadd.f32 %v1639_v36, %v1521_v22 }
 0x166   : > { %v2179_v4 = vpop.f32.mrf.mxu0 }
 0x167   : > { %2251 = vst.msk [vmem:[%s3573_s29 + $0x10] sm:$0xff] %vm2248_vm8, %v2234_v2 }
 0x168   : > { %v1973_v44 = vpop.f32.mrf.mxu3  ;;  %v1490_v38 = vpop.f32.mrf.mxu1 }
 0x169   : > { %v2009_v43 = vadd.f32 %v1973_v44, %v1675_v50  ;;  %v1523_v54 = vadd.f32 %v1490_v38, %v3428_v3 }
 0x16b   : > { %v2215_v23 = vadd.f32 %v2179_v4, %v2009_v43 }
 0x16c   : > { %v1642_v59 = vpop.f32.mrf.mxu2 }
 0x16d   : > { %v2235_v30 = vadd.f32 %v3567_v39, %v2215_v23  ;;  %v1676_v41 = vadd.f32 %v1642_v59, %v1522_v24 }
 0x16e   : > { %v2182_v33 = vpop.f32.mrf.mxu0 }
 0x16f   : > { %2252 = vst.msk [vmem:[%s3573_s29 + $0x18] sm:$0xff] %vm2248_vm8, %v2235_v30 }
 0x170   : > { %v1976_v52 = vpop.f32.mrf.mxu3  ;;  %v1493_v15 = vpop.f32.mrf.mxu1 }
 0x171   : > { %v2010_v37 = vadd.f32 %v1976_v52, %v1676_v41  ;;  %v1524_v61 = vadd.f32 %v1493_v15, %v3442_v12 }
 0x173   : > { %v2216_v56 = vadd.f32 %v2182_v33, %v2010_v37 }
 0x174   : > { %v1644_v57 = vpop.f32.mrf.mxu2 }
 0x175   : > { %v2236_v32 = vadd.f32 %v3567_v39, %v2216_v56  ;;  %v1677_v5 = vadd.f32 %v1644_v57, %v1523_v54 }
 0x176   : > { %v2184_v47 = vpop.f32.mrf.mxu0 }
 0x177   : > { %2253 = vst.msk [vmem:[%s3573_s29 + $0x20] sm:$0xff] %vm2248_vm8, %v2236_v32 }
 0x178   : > { %v1978_v46 = vpop.f32.mrf.mxu3  ;;  %v1495_v31 = vpop.f32.mrf.mxu1 }
 0x179   : > { %v2011_v27 = vadd.f32 %v1978_v46, %v1677_v5  ;;  %v1525_v7 = vadd.f32 %v1495_v31, %v3464_v16 }
 0x17b   : > { %v2217_v48 = vadd.f32 %v2184_v47, %v2011_v27 }
 0x17c   : > { %v1647_v42 = vpop.f32.mrf.mxu2 }
 0x17d   : > { %v2237_v11 = vadd.f32 %v3567_v39, %v2217_v48  ;;  %v1678_v25 = vadd.f32 %v1647_v42, %v1524_v61 }
 0x17e   : > { %v2187_v26 = vpop.f32.mrf.mxu0 }
 0x17f   : > { %2254 = vst.msk [vmem:[%s3573_s29 + $0x28] sm:$0xff] %vm2248_vm8, %v2237_v11 }
 0x180   : > { %v1981_v3 = vpop.f32.mrf.mxu3  ;;  %v1498_v40 = vpop.f32.mrf.mxu1 }
 0x181   : > { %v2012_v51 = vadd.f32 %v1981_v3, %v1678_v25  ;;  %v1526_v34 = vadd.f32 %v1498_v40, %v3484_v18 }
 0x183   : > { %v2218_v10 = vadd.f32 %v2187_v26, %v2012_v51 }
 0x184   : > { %v1649_v55 = vpop.f32.mrf.mxu2 }
 0x185   : > { %v2238_v53 = vadd.f32 %v3567_v39, %v2218_v10  ;;  %v1679_v45 = vadd.f32 %v1649_v55, %v1525_v7 }
 0x186   : > { %v2189_v62 = vpop.f32.mrf.mxu0 }
 0x187   : > { %2255 = vst.msk [vmem:[%s3573_s29 + $0x30] sm:$0xff] %vm2248_vm8, %v2238_v53 }
 0x188   : > { %v1983_v12 = vpop.f32.mrf.mxu3  ;;  %v1500_v0 = vpop.f32.mrf.mxu1 }
 0x189   : > { %v2013_v1 = vadd.f32 %v1983_v12, %v1679_v45  ;;  %v1527_v60 = vadd.f32 %v1500_v0, %v3498_v9 }
 0x18b   : > { %v2219_v21 = vadd.f32 %v2189_v62, %v2013_v1 }
 0x18c   : > { %v1652_v63 = vpop.f32.mrf.mxu2 }
 0x18d   : > { %v2239_v19 = vadd.f32 %v3567_v39, %v2219_v21  ;;  %v1680_v6 = vadd.f32 %v1652_v63, %v1526_v34 }
 0x18e   : > { %v2192_v35 = vpop.f32.mrf.mxu0 }
 0x18f   : > { %2256 = vst.msk [vmem:[%s3573_s29 + $0x38] sm:$0xff] %vm2248_vm8, %v2239_v19 }
 0x190   : > { %v1986_v16 = vpop.f32.mrf.mxu3  ;;  %v1503_v20 = vpop.f32.mrf.mxu1 }
 0x191   : > { %v2014_v14 = vadd.f32 %v1986_v16, %v1680_v6  ;;  %v1528_v43 = vadd.f32 %v1503_v20, %v3517_v17 }
 0x193   : > { %v2220_v13 = vadd.f32 %v2192_v35, %v2014_v14 }
 0x194   : > { %v1654_v22 = vpop.f32.mrf.mxu2 }
 0x195   : > { %v2240_v36 = vadd.f32 %v3567_v39, %v2220_v13  ;;  %v1681_v2 = vadd.f32 %v1654_v22, %v1527_v60 }
 0x196   : > { %v2194_v50 = vpop.f32.mrf.mxu0 }
 0x197   : > { %2257 = vst.msk [vmem:[%s3573_s29 + $0x40] sm:$0xff] %vm2248_vm8, %v2240_v36 }
 0x198   : > { %v1988_v18 = vpop.f32.mrf.mxu3  ;;  %v1505_v4 = vpop.f32.mrf.mxu1 }
 0x199   : > { %v2015_v44 = vadd.f32 %v1988_v18, %v1681_v2  ;;  %v1529_v15 = vadd.f32 %v1505_v4, %v3531_v8 }
 0x19b   : > { %v2221_v38 = vadd.f32 %v2194_v50, %v2015_v44 }
 0x19c   : > { %v1657_v23 = vpop.f32.mrf.mxu2 }
 0x19d   : > { %v2241_v24 = vadd.f32 %v3567_v39, %v2221_v38  ;;  %v1682_v59 = vadd.f32 %v1657_v23, %v1528_v43 }
 0x19e   : > { %v2197_v30 = vpop.f32.mrf.mxu0 }
 0x19f   : > { %2258 = vst.msk [vmem:[%s3573_s29 + $0x48] sm:$0xff] %vm2248_vm8, %v2241_v24 }
 0x1a0   : > { %v1991_v9 = vpop.f32.mrf.mxu3  ;;  %v1508_v33 = vpop.f32.mrf.mxu1 }
 0x1a1   : > { %v2016_v41 = vadd.f32 %v1991_v9, %v1682_v59  ;;  %v1530_v47 = vadd.f32 %v1508_v33, %v3543_v58 }
 0x1a3   : > { %v2222_v52 = vadd.f32 %v2197_v30, %v2016_v41 }
 0x1a4   : > { %v1659_v37 = vpop.f32.mrf.mxu2 }
 0x1a5   : > { %v2242_v56 = vadd.f32 %v3567_v39, %v2222_v52  ;;  %v1683_v54 = vadd.f32 %v1659_v37, %v1529_v15 }
 0x1a6   : > { %v2199_v57 = vpop.f32.mrf.mxu0 }
 0x1a7   : > { %2259 = vst.msk [vmem:[%s3573_s29 + $0x50] sm:$0xff] %vm2248_vm8, %v2242_v56 }
 0x1a8   : > { %v1993_v17 = vpop.f32.mrf.mxu3  ;;  %v1510_v46 = vpop.f32.mrf.mxu1 }
 0x1a9   : > { %v2017_v32 = vadd.f32 %v1993_v17, %v1683_v54  ;;  %v1531_v25 = vadd.f32 %v1510_v46, %v3552_v28 }
 0x1ab   : > { %v2223_v5 = vadd.f32 %v2199_v57, %v2017_v32 }
 0x1ac   : > { %v1662_v31 = vpop.f32.mrf.mxu2 }
 0x1ad   : > { %v2243_v27 = vadd.f32 %v3567_v39, %v2223_v5  ;;  %v1684_v48 = vadd.f32 %v1662_v31, %v1530_v47 }
 0x1ae   : > { %v2202_v61 = vpop.f32.mrf.mxu0 }
 0x1af   : > { %2260 = vst.msk [vmem:[%s3573_s29 + $0x58] sm:$0xff] %vm2248_vm8, %v2243_v27 }
 0x1b0   : > { %v1996_v8 = vpop.f32.mrf.mxu3  ;;  %v1513_v58 = vpop.f32.mrf.mxu1 }
 0x1b1   : > { %v2018_v42 = vadd.f32 %v1996_v8, %v1684_v48  ;;  %v1532_v53 = vadd.f32 %v1513_v58, %v3558_v29 }
 0x1b3   : > { %v2224_v11 = vadd.f32 %v2202_v61, %v2018_v42 }
 0x1b4   : > { %v1664_v26 = vpop.f32.mrf.mxu2 }
 0x1b5   : > { %v2244_v3 = vadd.f32 %v3567_v39, %v2224_v11  ;;  %v1685_v40 = vadd.f32 %v1664_v26, %v1531_v25 }
 0x1b6   : > { %v2204_v51 = vpop.f32.mrf.mxu0 }
 0x1b7   : > { %2261 = vst.msk [vmem:[%s3573_s29 + $0x60] sm:$0xff] %vm2248_vm8, %v2244_v3 }
 0x1b8   : > { %v1998_v10 = vpop.f32.mrf.mxu3  ;;  %v1515_v28 = vpop.f32.mrf.mxu1 }
 0x1b9   : > { %v2019_v7 = vadd.f32 %v1998_v10, %v1685_v40  ;;  %v1533_v63 = vadd.f32 %v1515_v28, %v3562_v49 }
 0x1bb   : > { %v2225_v55 = vadd.f32 %v2204_v51, %v2019_v7 }
 0x1bc   : > { %v1667_v45 = vpop.f32.mrf.mxu2 }
 0x1bd   : > { %v2245_v62 = vadd.f32 %v3567_v39, %v2225_v55  ;;  %v1686_v12 = vadd.f32 %v1667_v45, %v1532_v53 }
 0x1be   : > { %v2207_v0 = vpop.f32.mrf.mxu0 }
 0x1bf   : > { %2262 = vst.msk [vmem:[%s3573_s29 + $0x68] sm:$0xff] %vm2248_vm8, %v2245_v62 }
 0x1c0   : > { %v2001_v1 = vpop.f32.mrf.mxu3 }
 0x1c1   : > { %v2020_v21 = vadd.f32 %v2001_v1, %v1686_v12 }
 0x1c3   : > { %v2226_v34 = vadd.f32 %v2207_v0, %v2020_v21 }
 0x1c4   : > { %v1669_v19 = vpop.f32.mrf.mxu2 }
 0x1c5   : > { %v2246_v6 = vadd.f32 %v3567_v39, %v2226_v34  ;;  %v1687_v35 = vadd.f32 %v1669_v19, %v1533_v63 }
 0x1c6   : > { %v2209_v20 = vpop.f32.mrf.mxu0 }
 0x1c7   : > { %2263 = vst.msk [vmem:[%s3573_s29 + $0x70] sm:$0xff] %vm2248_vm8, %v2246_v6 }
 0x1c8   : > { %v2003_v29 = vpop.f32.mrf.mxu3 }
 0x1c9   : > { %v2021_v16 = vadd.f32 %v2003_v29, %v1687_v35 }
 0x1cb   : > { %v2227_v14 = vadd.f32 %v2209_v20, %v2021_v16 }
 0x1cd   : > { %v2247_v13 = vadd.f32 %v3567_v39, %v2227_v14 }
 0x1cf   : > { %2264 = vst.msk [vmem:[%s3573_s29 + $0x78] sm:$0xff] %vm2248_vm8, %v2247_v13 }
 0x1d0 PF: > { %s13_s16 = sadd.s32 1, %s2781_s16   ;;  %s3660_s12 = smov %s2773_s14 }
 0x1d1   : > { %p10_p7 = scmp.ge.s32.totalorder %s13_s16, 6   ;;  %s3661_s13 = smov %s2777_s15 }
 0x1d2   : > { %s3662_s14 = smov %s3665_s17  ;;  %s3663_s15 = smov %s3669_s18 }
 0x1d3   :  { %12 = sbr.rel (!%p10_p7) target bundleno = 3 (0x3), region = 73 }

</bundles_post_ra>
